<compile_context>
chip_gen: v7x
topology: tpu7x:2x2x1
jax: 0.10.0
libtpu: 0.0.40
codegen_flags: <defaults>
</compile_context>

<pallas_src>
import functools

import jax
import jax.numpy as jnp
from jax.experimental import pallas as pl
from jax.experimental.pallas import tpu as pltpu

EPS = 1e-5

# Feed bf16 operands to the MXU (accumulation stays f32).  Left off so the
# numerics match the f32 PyTorch module to ~1e-4; flip on for extra MXU /
# bandwidth headroom once bf16-level error (~1e-2) is acceptable.
USE_BF16_MATMUL = False

_TM_CAP = 4096      # per-grid-step M tile (bounds per-step temporaries)


def _round_up(x, m):
    return (x + m - 1) // m * m


def _pick_chunk(width):
    """Largest lane-aligned chunk that divides the guarded output width."""
    for c in (2048, 1024, 512, 256, 128):
        if width % c == 0:
            return c
    return 128


# ---------------------------------------------------------------------------
# Fused Conv3x3 (no bias) + BatchNorm (batch stats) + ReLU for one layer.
#
# Layout: x_ref/o_ref are channel-major flattened images with padded spatial
# dims (Hp = H+2, Wp = W+2) plus `guard` zero columns on each side:
#   column guard + p  <->  flat padded position p = n*Hp*Wp + h*Wp + w.
# Grid: M tiles.  Each step does the conv tile as 9 statically-shifted
# accumulating matmuls straight off the resident input, accumulates masked
# per-channel sum / sumsq, and writes the pre-BN tile into the resident
# output block.  The last step turns the stats into scale/shift and applies
# BN + ReLU in place (chunked), forcing every invalid column to exactly 0 so
# the buffer doubles as the next layer's zero-padded input.
# ---------------------------------------------------------------------------
def _fused_conv_bn_relu_kernel(x_ref, w_ref, g_ref, b_ref, mask_ref,
                               o_ref, ssum_ref, ssq_ref, *,
                               wp, guard, tm, m_true, chunk, n_chunks):
    i = pl.program_id(0)
    cout = o_ref.shape[0]

    @pl.when(i == 0)
    def _init():
        ssum_ref[...] = jnp.zeros_like(ssum_ref)
        ssq_ref[...] = jnp.zeros_like(ssq_ref)

    # ---- conv tile: in-kernel im2col as 9 shifted accumulating matmuls ----
    start = pl.multiple_of(i * tm, 128)
    halo = x_ref[:, pl.ds(start, tm + 2 * guard)]          # (Cin, tm + 2*guard)
    if USE_BF16_MATMUL:
        halo = halo.astype(jnp.bfloat16)

    acc = jnp.zeros((cout, tm), jnp.float32)
    for t in range(9):
        kh, kw = divmod(t, 3)
        d = (kh - 1) * wp + (kw - 1)                        # static tap offset
        a = halo[:, guard + d: guard + d + tm]              # (Cin, tm)
        w_tap = w_ref[t]                                    # (Cout, Cin)
        if USE_BF16_MATMUL:
            w_tap = w_tap.astype(jnp.bfloat16)
        acc = acc + jnp.dot(w_tap, a, preferred_element_type=jnp.float32)

    # ---- per-tile partial batch statistics over valid pixels only ----
    ostart = pl.multiple_of(start + guard, 128)
    msk = mask_ref[:, pl.ds(ostart, tm)]                    # (1, tm)
    accv = jnp.where(msk > 0.0, acc, 0.0)
    ssum_ref[...] += jnp.sum(accv, axis=-1, keepdims=True)
    ssq_ref[...] += jnp.sum(accv * accv, axis=-1, keepdims=True)

    # Pre-BN conv result accumulates straight into the resident output block.
    o_ref[:, pl.ds(ostart, tm)] = acc

    # ---- finalize: BN + ReLU applied in place, chunked ----
    @pl.when(i == pl.num_programs(0) - 1)
    def _finalize():
        inv_m = jnp.float32(1.0 / m_true)
        mean = ssum_ref[...] * inv_m                        # (Cout, 1)
        var = jnp.maximum(ssq_ref[...] * inv_m - mean * mean, 0.0)   # biased
        scale = g_ref[...] * jax.lax.rsqrt(var + jnp.float32(EPS))
        shift = b_ref[...] - mean * scale

        def _apply(j, carry):
            c0 = pl.multiple_of(j * chunk, 128)
            y = o_ref[:, pl.ds(c0, chunk)]
            m = mask_ref[:, pl.ds(c0, chunk)]
            y = jnp.maximum(y * scale + shift, 0.0)
            # Invalid (spatial-pad / guard / tail) columns are forced to zero
            # so this buffer is directly usable as layer 2's padded input.
            o_ref[:, pl.ds(c0, chunk)] = jnp.where(m > 0.0, y, 0.0)
            return carry

        jax.lax.fori_loop(0, n_chunks, _apply, 0)


def _conv_bn_relu_layer(x_flat, w_pt, gamma, beta, mask, *,
                        wp, guard, mo, tm, wtot, m_true):
    """x_flat: (Cin, wtot) zero-guarded channel-major flattened padded input."""
    cin = x_flat.shape[0]
    cout = w_pt.shape[0]
    assert w_pt.shape[1] == cin and w_pt.shape[2:] == (3, 3)

    # NOTE: conv bias intentionally dropped -- cancelled exactly by the
    # train-mode BatchNorm mean subtraction that immediately follows.
    w9 = jnp.transpose(w_pt.reshape(cout, cin, 9), (2, 0, 1))   # (9, Cout, Cin)

    n_tiles = mo // tm
    chunk = _pick_chunk(wtot)
    n_chunks = wtot // chunk

    kernel = functools.partial(
        _fused_conv_bn_relu_kernel,
        wp=wp, guard=guard, tm=tm, m_true=m_true, chunk=chunk,
        n_chunks=n_chunks)

    # Resident VMEM: input + output + mask (all f32) + tiny weights/stats.
    resident = 4 * wtot * (cin + cout + 1) + 4 * 9 * cout * cin + 1024
    vmem_limit = int(min(96 * 2**20, max(32 * 2**20, 2 * resident + (8 << 20))))

    return pl.pallas_call(
        kernel,
        out_shape=jax.ShapeDtypeStruct((cout, wtot), jnp.float32),
        grid=(n_tiles,),
        in_specs=[
            pl.BlockSpec((cin, wtot), lambda i: (0, 0)),        # input (resident, read once)
            pl.BlockSpec((9, cout, cin), lambda i: (0, 0, 0)),  # per-tap weights
            pl.BlockSpec((cout, 1), lambda i: (0, 0)),          # gamma
            pl.BlockSpec((cout, 1), lambda i: (0, 0)),          # beta
            pl.BlockSpec((1, wtot), lambda i: (0, 0)),          # valid-pixel mask
        ],
        out_specs=pl.BlockSpec((cout, wtot), lambda i: (0, 0)), # resident accumulator
        scratch_shapes=[pltpu.VMEM((cout, 1), jnp.float32),     # sum
                        pltpu.VMEM((cout, 1), jnp.float32)],    # sum of squares
        compiler_params=pltpu.CompilerParams(
            dimension_semantics=("arbitrary",),
            vmem_limit_bytes=vmem_limit,
        ),
    )(x_flat, w9, gamma.reshape(cout, 1), beta.reshape(cout, 1), mask)


@jax.jit
def conv_block_forward(x_nchw, params):
    n, cin, h, w = x_nchw.shape
    cout = params["w1"].shape[0]
    hp, wp = h + 2, w + 2
    mtot = n * hp * wp                         # flattened padded spatial length
    m_true = n * h * w                         # number of real output pixels
    guard = _round_up(wp + 1, 128)             # halo guard, lane-aligned
    tm = min(_TM_CAP, _round_up(mtot, 128))
    mo = _round_up(mtot, tm)
    wtot = mo + 2 * guard

    # The only wrapper-side data prep: spatial pad + channel-major flatten of
    # the raw input (~1.3x input bytes), instead of a 9x im2col patch matrix.
    xp = jnp.pad(x_nchw, ((0, 0), (0, 0), (1, 1), (1, 1)))          # (N,Cin,Hp,Wp)
    xf = jnp.transpose(xp, (1, 0, 2, 3)).reshape(cin, mtot).astype(jnp.float32)
    x_flat = jnp.pad(xf, ((0, 0), (guard, wtot - guard - mtot)))

    # Valid-pixel mask in the same guarded flat layout (shared by both layers).
    core = jnp.zeros((hp, wp), jnp.float32).at[1:h + 1, 1:w + 1].set(1.0)
    maskf = jnp.tile(core.reshape(-1), (n,))[None, :]
    mask = jnp.pad(maskf, ((0, 0), (guard, wtot - guard - mtot)))

    geom = dict(wp=wp, guard=guard, mo=mo, tm=tm, wtot=wtot, m_true=m_true)

    # Layer 1 writes its activation in the same guarded flat layout with exact
    # zeros at every padding column, so layer 2 consumes it directly -- no HBM
    # transposes or repacking at the layer boundary.
    a1 = _conv_bn_relu_layer(x_flat, params["w1"], params["g1"], params["be1"],
                             mask, **geom)
    a2 = _conv_bn_relu_layer(a1, params["w2"], params["g2"], params["be2"],
                             mask, **geom)

    # Single NCHW extraction at the very end.
    y = a2[:, guard:guard + mtot].reshape(cout, n, hp, wp)[:, :, 1:h + 1, 1:w + 1]
    return jnp.transpose(y, (1, 0, 2, 3))


# ---------------------------------------------------------------------------
# Pure-JAX reference (with the conv bias, to verify its exact cancellation).
# ---------------------------------------------------------------------------
def _ref_conv_bn_relu(x_nchw, w_pt, b, gamma, beta):
    y = jax.lax.conv_general_dilated(
        x_nchw, w_pt, window_strides=(1, 1), padding=((1, 1), (1, 1)),
        dimension_numbers=("NCHW", "OIHW", "NCHW"))
    y = y + b.reshape(1, -1, 1, 1)
    mean = jnp.mean(y, axis=(0, 2, 3), keepdims=True)
    var = jnp.var(y, axis=(0, 2, 3), keepdims=True)           # biased
    y = (y - mean) / jnp.sqrt(var + EPS)
    y = y * gamma.reshape(1, -1, 1, 1) + beta.reshape(1, -1, 1, 1)
    return jnp.maximum(y, 0.0)


def _ref_forward(x, params):
    y = _ref_conv_bn_relu(x, params["w1"], params["b1"],
                          params["g1"], params["be1"])
    y = _ref_conv_bn_relu(y, params["w2"], params["b2"],
                          params["g2"], params["be2"])
    return y


# ---------------------------------------------------------------------------
if __name__ == "__main__":
    key = jax.random.PRNGKey(0)
    in_ch, out_ch = 4, 8
    n, h, w = 2, 16, 16

    ks = jax.random.split(key, 8)
    params = {
        "w1": 0.1 * jax.random.normal(ks[0], (out_ch, in_ch, 3, 3), jnp.float32),
        "b1": 0.1 * jax.random.normal(ks[1], (out_ch,), jnp.float32),
        "g1": jnp.ones((out_ch,), jnp.float32),
        "be1": jnp.zeros((out_ch,), jnp.float32),
        "w2": 0.1 * jax.random.normal(ks[2], (out_ch, out_ch, 3, 3), jnp.float32),
        "b2": 0.1 * jax.random.normal(ks[3], (out_ch,), jnp.float32),
        "g2": jnp.ones((out_ch,), jnp.float32),
        "be2": jnp.zeros((out_ch,), jnp.float32),
    }
    x = jax.random.normal(ks[4], (n, in_ch, h, w), jnp.float32)

    out = conv_block_forward(x, params)
    out = jax.block_until_ready(out)

    ref = _ref_forward(x, params)
    assert out.shape == (n, out_ch, h, w)
    err = float(jnp.max(jnp.abs(out - ref)))
    assert jnp.allclose(out, ref, atol=1e-4, rtol=1e-4), err

    print("KERNEL_OK")
</pallas_src>

<mosaic_0001>
module attributes {stable_mosaic.version = 11 : i64} {
  func.func @_fused_conv_bn_relu_kernel(%arg0: i32, %arg1: memref<4x1024xf32, #tpu.memory_space<vmem>>, %arg2: memref<9x8x4xf32, #tpu.memory_space<vmem>>, %arg3: memref<8x1xf32, #tpu.memory_space<vmem>>, %arg4: memref<8x1xf32, #tpu.memory_space<vmem>>, %arg5: memref<1x1024xf32, #tpu.memory_space<vmem>>, %arg6: memref<8x1024xf32, #tpu.memory_space<vmem>>, %arg7: memref<8x1xf32, #tpu.memory_space<vmem>>, %arg8: memref<8x1xf32, #tpu.memory_space<vmem>>) attributes {dimension_semantics = [#tpu.dimension_semantics<arbitrary>], iteration_bounds = array<i64: 1>, scalar_prefetch = 0 : i64, scratch_operands = 2 : i64, tpu.core_type = #tpu.core_type<tc>, window_params = [{pipeline_mode = #tpu.pipeline_mode<synchronous>, transform_indices = @transform_0, window_bounds = array<i64: 4, 1024>}, {pipeline_mode = #tpu.pipeline_mode<synchronous>, transform_indices = @transform_1, window_bounds = array<i64: 9, 8, 4>}, {pipeline_mode = #tpu.pipeline_mode<synchronous>, transform_indices = @transform_2, window_bounds = array<i64: 8, 1>}, {pipeline_mode = #tpu.pipeline_mode<synchronous>, transform_indices = @transform_3, window_bounds = array<i64: 8, 1>}, {pipeline_mode = #tpu.pipeline_mode<synchronous>, transform_indices = @transform_4, window_bounds = array<i64: 1, 1024>}, {pipeline_mode = #tpu.pipeline_mode<synchronous>, transform_indices = @transform_5, window_bounds = array<i64: 8, 1024>}]} {
    %c0_i32 = arith.constant 0 : i32
    %0 = arith.cmpi eq, %arg0, %c0_i32 : i32
    %1 = arith.extui %0 : i1 to i32
    %c0_i32_0 = arith.constant 0 : i32
    %2 = arith.cmpi ne, %1, %c0_i32_0 : i32
    scf.if %2 {
      %cst_45 = arith.constant 0.000000e+00 : f32
      %79 = vector.broadcast %cst_45 : f32 to vector<8x1xf32>
      %c0_46 = arith.constant 0 : index
      %c0_47 = arith.constant 0 : index
      %80 = vector.load %arg7[%c0_46, %c0_47] : memref<8x1xf32, #tpu.memory_space<vmem>>, vector<8x1xf32>
      tpu.vector_store %arg7[%c0_46, %c0_47], %79 {strides = array<i32>} : memref<8x1xf32, #tpu.memory_space<vmem>>, vector<8x1xf32>,
      %cst_48 = arith.constant 0.000000e+00 : f32
      %81 = vector.broadcast %cst_48 : f32 to vector<8x1xf32>
      %c0_49 = arith.constant 0 : index
      %c0_50 = arith.constant 0 : index
      %82 = vector.load %arg8[%c0_49, %c0_50] : memref<8x1xf32, #tpu.memory_space<vmem>>, vector<8x1xf32>
      tpu.vector_store %arg8[%c0_49, %c0_50], %81 {strides = array<i32>} : memref<8x1xf32, #tpu.memory_space<vmem>>, vector<8x1xf32>,
    } else {
    }
    %c768_i32 = arith.constant 768 : i32
    %3 = arith.muli %arg0, %c768_i32 : i32
    %4 = tpu.assume_multiple %3, 128 : i32
    %c0 = arith.constant 0 : index
    %5 = arith.index_cast %4 : i32 to index
    %6 = vector.load %arg1[%c0, %5] : memref<4x1024xf32, #tpu.memory_space<vmem>>, vector<4x1024xf32>
    %cst = arith.constant 0.000000e+00 : f32
    %7 = vector.broadcast %cst : f32 to vector<8x768xf32>
    %8 = vector.extract_strided_slice %6 {offsets = [0, 109], sizes = [4, 768], strides = [1, 1]} : vector<4x1024xf32> to vector<4x768xf32>
    %c0_1 = arith.constant 0 : index
    %c0_2 = arith.constant 0 : index
    %c0_3 = arith.constant 0 : index
    %9 = vector.load %arg2[%c0_1, %c0_2, %c0_3] : memref<9x8x4xf32, #tpu.memory_space<vmem>>, vector<1x8x4xf32>
    %10 = vector.shape_cast %9 : vector<1x8x4xf32> to vector<8x4xf32>
    %cst_4 = arith.constant dense<0.000000e+00> : vector<8x768xf32>
    %11 = tpu.matmul %10, %8, %cst_4 {dimension_numbers = #tpu.dot_dimension_numbers<[1], [0], [0], [1], [0, 0, 1, 1], [], []>} : vector<8x4xf32>, vector<4x768xf32>, vector<8x768xf32> -> vector<8x768xf32>
    %12 = arith.addf %7, %11 : vector<8x768xf32>
    %13 = vector.extract_strided_slice %6 {offsets = [0, 110], sizes = [4, 768], strides = [1, 1]} : vector<4x1024xf32> to vector<4x768xf32>
    %c1 = arith.constant 1 : index
    %c0_5 = arith.constant 0 : index
    %c0_6 = arith.constant 0 : index
    %14 = vector.load %arg2[%c1, %c0_5, %c0_6] : memref<9x8x4xf32, #tpu.memory_space<vmem>>, vector<1x8x4xf32>
    %15 = vector.shape_cast %14 : vector<1x8x4xf32> to vector<8x4xf32>
    %cst_7 = arith.constant dense<0.000000e+00> : vector<8x768xf32>
    %16 = tpu.matmul %15, %13, %cst_7 {dimension_numbers = #tpu.dot_dimension_numbers<[1], [0], [0], [1], [0, 0, 1, 1], [], []>} : vector<8x4xf32>, vector<4x768xf32>, vector<8x768xf32> -> vector<8x768xf32>
    %17 = arith.addf %12, %16 : vector<8x768xf32>
    %18 = vector.extract_strided_slice %6 {offsets = [0, 111], sizes = [4, 768], strides = [1, 1]} : vector<4x1024xf32> to vector<4x768xf32>
    %c2 = arith.constant 2 : index
    %c0_8 = arith.constant 0 : index
    %c0_9 = arith.constant 0 : index
    %19 = vector.load %arg2[%c2, %c0_8, %c0_9] : memref<9x8x4xf32, #tpu.memory_space<vmem>>, vector<1x8x4xf32>
    %20 = vector.shape_cast %19 : vector<1x8x4xf32> to vector<8x4xf32>
    %cst_10 = arith.constant dense<0.000000e+00> : vector<8x768xf32>
    %21 = tpu.matmul %20, %18, %cst_10 {dimension_numbers = #tpu.dot_dimension_numbers<[1], [0], [0], [1], [0, 0, 1, 1], [], []>} : vector<8x4xf32>, vector<4x768xf32>, vector<8x768xf32> -> vector<8x768xf32>
    %22 = arith.addf %17, %21 : vector<8x768xf32>
    %23 = vector.extract_strided_slice %6 {offsets = [0, 127], sizes = [4, 768], strides = [1, 1]} : vector<4x1024xf32> to vector<4x768xf32>
    %c3 = arith.constant 3 : index
    %c0_11 = arith.constant 0 : index
    %c0_12 = arith.constant 0 : index
    %24 = vector.load %arg2[%c3, %c0_11, %c0_12] : memref<9x8x4xf32, #tpu.memory_space<vmem>>, vector<1x8x4xf32>
    %25 = vector.shape_cast %24 : vector<1x8x4xf32> to vector<8x4xf32>
    %cst_13 = arith.constant dense<0.000000e+00> : vector<8x768xf32>
    %26 = tpu.matmul %25, %23, %cst_13 {dimension_numbers = #tpu.dot_dimension_numbers<[1], [0], [0], [1], [0, 0, 1, 1], [], []>} : vector<8x4xf32>, vector<4x768xf32>, vector<8x768xf32> -> vector<8x768xf32>
    %27 = arith.addf %22, %26 : vector<8x768xf32>
    %28 = vector.extract_strided_slice %6 {offsets = [0, 128], sizes = [4, 768], strides = [1, 1]} : vector<4x1024xf32> to vector<4x768xf32>
    %c4 = arith.constant 4 : index
    %c0_14 = arith.constant 0 : index
    %c0_15 = arith.constant 0 : index
    %29 = vector.load %arg2[%c4, %c0_14, %c0_15] : memref<9x8x4xf32, #tpu.memory_space<vmem>>, vector<1x8x4xf32>
    %30 = vector.shape_cast %29 : vector<1x8x4xf32> to vector<8x4xf32>
    %cst_16 = arith.constant dense<0.000000e+00> : vector<8x768xf32>
    %31 = tpu.matmul %30, %28, %cst_16 {dimension_numbers = #tpu.dot_dimension_numbers<[1], [0], [0], [1], [0, 0, 1, 1], [], []>} : vector<8x4xf32>, vector<4x768xf32>, vector<8x768xf32> -> vector<8x768xf32>
    %32 = arith.addf %27, %31 : vector<8x768xf32>
    %33 = vector.extract_strided_slice %6 {offsets = [0, 129], sizes = [4, 768], strides = [1, 1]} : vector<4x1024xf32> to vector<4x768xf32>
    %c5 = arith.constant 5 : index
    %c0_17 = arith.constant 0 : index
    %c0_18 = arith.constant 0 : index
    %34 = vector.load %arg2[%c5, %c0_17, %c0_18] : memref<9x8x4xf32, #tpu.memory_space<vmem>>, vector<1x8x4xf32>
    %35 = vector.shape_cast %34 : vector<1x8x4xf32> to vector<8x4xf32>
    %cst_19 = arith.constant dense<0.000000e+00> : vector<8x768xf32>
    %36 = tpu.matmul %35, %33, %cst_19 {dimension_numbers = #tpu.dot_dimension_numbers<[1], [0], [0], [1], [0, 0, 1, 1], [], []>} : vector<8x4xf32>, vector<4x768xf32>, vector<8x768xf32> -> vector<8x768xf32>
    %37 = arith.addf %32, %36 : vector<8x768xf32>
    %38 = vector.extract_strided_slice %6 {offsets = [0, 145], sizes = [4, 768], strides = [1, 1]} : vector<4x1024xf32> to vector<4x768xf32>
    %c6 = arith.constant 6 : index
    %c0_20 = arith.constant 0 : index
    %c0_21 = arith.constant 0 : index
    %39 = vector.load %arg2[%c6, %c0_20, %c0_21] : memref<9x8x4xf32, #tpu.memory_space<vmem>>, vector<1x8x4xf32>
    %40 = vector.shape_cast %39 : vector<1x8x4xf32> to vector<8x4xf32>
    %cst_22 = arith.constant dense<0.000000e+00> : vector<8x768xf32>
    %41 = tpu.matmul %40, %38, %cst_22 {dimension_numbers = #tpu.dot_dimension_numbers<[1], [0], [0], [1], [0, 0, 1, 1], [], []>} : vector<8x4xf32>, vector<4x768xf32>, vector<8x768xf32> -> vector<8x768xf32>
    %42 = arith.addf %37, %41 : vector<8x768xf32>
    %43 = vector.extract_strided_slice %6 {offsets = [0, 146], sizes = [4, 768], strides = [1, 1]} : vector<4x1024xf32> to vector<4x768xf32>
    %c7 = arith.constant 7 : index
    %c0_23 = arith.constant 0 : index
    %c0_24 = arith.constant 0 : index
    %44 = vector.load %arg2[%c7, %c0_23, %c0_24] : memref<9x8x4xf32, #tpu.memory_space<vmem>>, vector<1x8x4xf32>
    %45 = vector.shape_cast %44 : vector<1x8x4xf32> to vector<8x4xf32>
    %cst_25 = arith.constant dense<0.000000e+00> : vector<8x768xf32>
    %46 = tpu.matmul %45, %43, %cst_25 {dimension_numbers = #tpu.dot_dimension_numbers<[1], [0], [0], [1], [0, 0, 1, 1], [], []>} : vector<8x4xf32>, vector<4x768xf32>, vector<8x768xf32> -> vector<8x768xf32>
    %47 = arith.addf %42, %46 : vector<8x768xf32>
    %48 = vector.extract_strided_slice %6 {offsets = [0, 147], sizes = [4, 768], strides = [1, 1]} : vector<4x1024xf32> to vector<4x768xf32>
    %c8 = arith.constant 8 : index
    %c0_26 = arith.constant 0 : index
    %c0_27 = arith.constant 0 : index
    %49 = vector.load %arg2[%c8, %c0_26, %c0_27] : memref<9x8x4xf32, #tpu.memory_space<vmem>>, vector<1x8x4xf32>
    %50 = vector.shape_cast %49 : vector<1x8x4xf32> to vector<8x4xf32>
    %cst_28 = arith.constant dense<0.000000e+00> : vector<8x768xf32>
    %51 = tpu.matmul %50, %48, %cst_28 {dimension_numbers = #tpu.dot_dimension_numbers<[1], [0], [0], [1], [0, 0, 1, 1], [], []>} : vector<8x4xf32>, vector<4x768xf32>, vector<8x768xf32> -> vector<8x768xf32>
    %52 = arith.addf %47, %51 : vector<8x768xf32>
    %c128_i32 = arith.constant 128 : i32
    %53 = arith.addi %4, %c128_i32 : i32
    %54 = tpu.assume_multiple %53, 128 : i32
    %c0_29 = arith.constant 0 : index
    %55 = arith.index_cast %54 : i32 to index
    %56 = vector.load %arg5[%c0_29, %55] : memref<1x1024xf32, #tpu.memory_space<vmem>>, vector<1x768xf32>
    %cst_30 = arith.constant 0.000000e+00 : f32
    %57 = vector.broadcast %cst_30 : f32 to vector<1x768xf32>
    %58 = arith.cmpf ogt, %56, %57 : vector<1x768xf32>
    %cst_31 = arith.constant 0.000000e+00 : f32
    %59 = vector.shape_cast %58 : vector<1x768xi1> to vector<1x768xi1>
    %60 = vector.broadcast %59 : vector<1x768xi1> to vector<8x768xi1>
    %61 = vector.broadcast %cst_31 : f32 to vector<8x768xf32>
    %62 = arith.select %60, %52, %61 : vector<8x768xi1>, vector<8x768xf32>
    %c0_32 = arith.constant 0 : index
    %c0_33 = arith.constant 0 : index
    %63 = vector.load %arg7[%c0_32, %c0_33] : memref<8x1xf32, #tpu.memory_space<vmem>>, vector<8x1xf32>
    %cst_34 = arith.constant dense<0.000000e+00> : vector<8xf32>
    %64 = vector.multi_reduction <add>, %62, %cst_34 [1] : vector<8x768xf32> to vector<8xf32>
    %65 = vector.shape_cast %64 : vector<8xf32> to vector<8x1xf32>
    %66 = arith.addf %63, %65 : vector<8x1xf32>
    %c0_35 = arith.constant 0 : index
    %c0_36 = arith.constant 0 : index
    %67 = vector.load %arg7[%c0_35, %c0_36] : memref<8x1xf32, #tpu.memory_space<vmem>>, vector<8x1xf32>
    tpu.vector_store %arg7[%c0_35, %c0_36], %66 {strides = array<i32>} : memref<8x1xf32, #tpu.memory_space<vmem>>, vector<8x1xf32>,
    %c0_37 = arith.constant 0 : index
    %c0_38 = arith.constant 0 : index
    %68 = vector.load %arg8[%c0_37, %c0_38] : memref<8x1xf32, #tpu.memory_space<vmem>>, vector<8x1xf32>
    %69 = arith.mulf %62, %62 : vector<8x768xf32>
    %cst_39 = arith.constant dense<0.000000e+00> : vector<8xf32>
    %70 = vector.multi_reduction <add>, %69, %cst_39 [1] : vector<8x768xf32> to vector<8xf32>
    %71 = vector.shape_cast %70 : vector<8xf32> to vector<8x1xf32>
    %72 = arith.addf %68, %71 : vector<8x1xf32>
    %c0_40 = arith.constant 0 : index
    %c0_41 = arith.constant 0 : index
    %73 = vector.load %arg8[%c0_40, %c0_41] : memref<8x1xf32, #tpu.memory_space<vmem>>, vector<8x1xf32>
    tpu.vector_store %arg8[%c0_40, %c0_41], %72 {strides = array<i32>} : memref<8x1xf32, #tpu.memory_space<vmem>>, vector<8x1xf32>,
    %c0_42 = arith.constant 0 : index
    %74 = arith.index_cast %54 : i32 to index
    %75 = vector.load %arg6[%c0_42, %74] : memref<8x1024xf32, #tpu.memory_space<vmem>>, vector<8x768xf32>
    tpu.vector_store %arg6[%c0_42, %74], %52 {strides = array<i32>} : memref<8x1024xf32, #tpu.memory_space<vmem>>, vector<8x768xf32>,
    %c0_i32_43 = arith.constant 0 : i32
    %76 = arith.cmpi eq, %arg0, %c0_i32_43 : i32
    %77 = arith.extui %76 : i1 to i32
    %c0_i32_44 = arith.constant 0 : i32
    %78 = arith.cmpi ne, %77, %c0_i32_44 : i32
    scf.if %78 {
      %c0_45 = arith.constant 0 : index
      %c0_46 = arith.constant 0 : index
      %79 = vector.load %arg7[%c0_45, %c0_46] : memref<8x1xf32, #tpu.memory_space<vmem>>, vector<8x1xf32>
      %cst_47 = arith.constant 0.001953125 : f32
      %80 = vector.broadcast %cst_47 : f32 to vector<8x1xf32>
      %81 = arith.mulf %79, %80 : vector<8x1xf32>
      %c0_48 = arith.constant 0 : index
      %c0_49 = arith.constant 0 : index
      %82 = vector.load %arg8[%c0_48, %c0_49] : memref<8x1xf32, #tpu.memory_space<vmem>>, vector<8x1xf32>
      %cst_50 = arith.constant 0.001953125 : f32
      %83 = vector.broadcast %cst_50 : f32 to vector<8x1xf32>
      %84 = arith.mulf %82, %83 : vector<8x1xf32>
      %85 = arith.mulf %81, %81 : vector<8x1xf32>
      %86 = arith.subf %84, %85 : vector<8x1xf32>
      %cst_51 = arith.constant 0.000000e+00 : f32
      %87 = vector.broadcast %cst_51 : f32 to vector<8x1xf32>
      %88 = arith.maximumf %86, %87 : vector<8x1xf32>
      %c0_52 = arith.constant 0 : index
      %c0_53 = arith.constant 0 : index
      %89 = vector.load %arg3[%c0_52, %c0_53] : memref<8x1xf32, #tpu.memory_space<vmem>>, vector<8x1xf32>
      %cst_54 = arith.constant 9.99999974E-6 : f32
      %90 = vector.broadcast %cst_54 : f32 to vector<8x1xf32>
      %91 = arith.addf %88, %90 : vector<8x1xf32>
      %92 = math.rsqrt %91 : vector<8x1xf32>
      %93 = arith.mulf %89, %92 : vector<8x1xf32>
      %c0_55 = arith.constant 0 : index
      %c0_56 = arith.constant 0 : index
      %94 = vector.load %arg4[%c0_55, %c0_56] : memref<8x1xf32, #tpu.memory_space<vmem>>, vector<8x1xf32>
      %95 = arith.mulf %81, %93 : vector<8x1xf32>
      %96 = arith.subf %94, %95 : vector<8x1xf32>
      %c0_i32_57 = arith.constant 0 : i32
      %c1024_i32 = arith.constant 1024 : i32
      %97 = arith.muli %c0_i32_57, %c1024_i32 : i32
      %98 = tpu.assume_multiple %97, 128 : i32
      %c0_58 = arith.constant 0 : index
      %99 = arith.index_cast %98 : i32 to index
      %100 = vector.load %arg6[%c0_58, %99] : memref<8x1024xf32, #tpu.memory_space<vmem>>, vector<8x1024xf32>
      %c0_59 = arith.constant 0 : index
      %101 = arith.index_cast %98 : i32 to index
      %102 = vector.load %arg5[%c0_59, %101] : memref<1x1024xf32, #tpu.memory_space<vmem>>, vector<1x1024xf32>
      %103 = vector.broadcast %93 : vector<8x1xf32> to vector<8x1024xf32>
      %104 = arith.mulf %100, %103 : vector<8x1024xf32>
      %105 = vector.broadcast %96 : vector<8x1xf32> to vector<8x1024xf32>
      %106 = arith.addf %104, %105 : vector<8x1024xf32>
      %cst_60 = arith.constant 0.000000e+00 : f32
      %107 = vector.broadcast %cst_60 : f32 to vector<8x1024xf32>
      %108 = arith.maximumf %106, %107 : vector<8x1024xf32>
      %cst_61 = arith.constant 0.000000e+00 : f32
      %109 = vector.broadcast %cst_61 : f32 to vector<1x1024xf32>
      %110 = arith.cmpf ogt, %102, %109 : vector<1x1024xf32>
      %cst_62 = arith.constant 0.000000e+00 : f32
      %111 = vector.shape_cast %110 : vector<1x1024xi1> to vector<1x1024xi1>
      %112 = vector.broadcast %111 : vector<1x1024xi1> to vector<8x1024xi1>
      %113 = vector.broadcast %cst_62 : f32 to vector<8x1024xf32>
      %114 = arith.select %112, %108, %113 : vector<8x1024xi1>, vector<8x1024xf32>
      %c0_63 = arith.constant 0 : index
      %115 = arith.index_cast %98 : i32 to index
      %116 = vector.load %arg6[%c0_63, %115] : memref<8x1024xf32, #tpu.memory_space<vmem>>, vector<8x1024xf32>
      tpu.vector_store %arg6[%c0_63, %115], %114 {strides = array<i32>} : memref<8x1024xf32, #tpu.memory_space<vmem>>, vector<8x1024xf32>,
      %c1_i32 = arith.constant 1 : i32
    } else {
    }
    return
  }
  func.func @transform_0(%arg0: i32) -> (i32, i32) {
    %c0_i32 = arith.constant 0 : i32
    %c0_i32_0 = arith.constant 0 : i32
    %c0_i32_1 = arith.constant 0 : i32
    return %c0_i32, %c0_i32_0 : i32, i32
  }
  func.func @transform_1(%arg0: i32) -> (i32, i32, i32) {
    %c0_i32 = arith.constant 0 : i32
    %c0_i32_0 = arith.constant 0 : i32
    %c0_i32_1 = arith.constant 0 : i32
    %c0_i32_2 = arith.constant 0 : i32
    return %c0_i32, %c0_i32_0, %c0_i32_1 : i32, i32, i32
  }
  func.func @transform_2(%arg0: i32) -> (i32, i32) {
    %c0_i32 = arith.constant 0 : i32
    %c0_i32_0 = arith.constant 0 : i32
    %c0_i32_1 = arith.constant 0 : i32
    return %c0_i32, %c0_i32_0 : i32, i32
  }
  func.func @transform_3(%arg0: i32) -> (i32, i32) {
    %c0_i32 = arith.constant 0 : i32
    %c0_i32_0 = arith.constant 0 : i32
    %c0_i32_1 = arith.constant 0 : i32
    return %c0_i32, %c0_i32_0 : i32, i32
  }
  func.func @transform_4(%arg0: i32) -> (i32, i32) {
    %c0_i32 = arith.constant 0 : i32
    %c0_i32_0 = arith.constant 0 : i32
    %c0_i32_1 = arith.constant 0 : i32
    return %c0_i32, %c0_i32_0 : i32, i32
  }
  func.func @transform_5(%arg0: i32) -> (i32, i32) {
    %c0_i32 = arith.constant 0 : i32
    %c0_i32_0 = arith.constant 0 : i32
    %c0_i32_1 = arith.constant 0 : i32
    return %c0_i32, %c0_i32_0 : i32, i32
  }
}

module attributes {stable_mosaic.version = 11 : i64} {
  func.func @_fused_conv_bn_relu_kernel(%arg0: i32, %arg1: memref<8x1024xf32, #tpu.memory_space<vmem>>, %arg2: memref<9x8x8xf32, #tpu.memory_space<vmem>>, %arg3: memref<8x1xf32, #tpu.memory_space<vmem>>, %arg4: memref<8x1xf32, #tpu.memory_space<vmem>>, %arg5: memref<1x1024xf32, #tpu.memory_space<vmem>>, %arg6: memref<8x1024xf32, #tpu.memory_space<vmem>>, %arg7: memref<8x1xf32, #tpu.memory_space<vmem>>, %arg8: memref<8x1xf32, #tpu.memory_space<vmem>>) attributes {dimension_semantics = [#tpu.dimension_semantics<arbitrary>], iteration_bounds = array<i64: 1>, scalar_prefetch = 0 : i64, scratch_operands = 2 : i64, tpu.core_type = #tpu.core_type<tc>, window_params = [{pipeline_mode = #tpu.pipeline_mode<synchronous>, transform_indices = @transform_0, window_bounds = array<i64: 8, 1024>}, {pipeline_mode = #tpu.pipeline_mode<synchronous>, transform_indices = @transform_1, window_bounds = array<i64: 9, 8, 8>}, {pipeline_mode = #tpu.pipeline_mode<synchronous>, transform_indices = @transform_2, window_bounds = array<i64: 8, 1>}, {pipeline_mode = #tpu.pipeline_mode<synchronous>, transform_indices = @transform_3, window_bounds = array<i64: 8, 1>}, {pipeline_mode = #tpu.pipeline_mode<synchronous>, transform_indices = @transform_4, window_bounds = array<i64: 1, 1024>}, {pipeline_mode = #tpu.pipeline_mode<synchronous>, transform_indices = @transform_5, window_bounds = array<i64: 8, 1024>}]} {
    %c0_i32 = arith.constant 0 : i32
    %0 = arith.cmpi eq, %arg0, %c0_i32 : i32
    %1 = arith.extui %0 : i1 to i32
    %c0_i32_0 = arith.constant 0 : i32
    %2 = arith.cmpi ne, %1, %c0_i32_0 : i32
    scf.if %2 {
      %cst_45 = arith.constant 0.000000e+00 : f32
      %79 = vector.broadcast %cst_45 : f32 to vector<8x1xf32>
      %c0_46 = arith.constant 0 : index
      %c0_47 = arith.constant 0 : index
      %80 = vector.load %arg7[%c0_46, %c0_47] : memref<8x1xf32, #tpu.memory_space<vmem>>, vector<8x1xf32>
      tpu.vector_store %arg7[%c0_46, %c0_47], %79 {strides = array<i32>} : memref<8x1xf32, #tpu.memory_space<vmem>>, vector<8x1xf32>,
      %cst_48 = arith.constant 0.000000e+00 : f32
      %81 = vector.broadcast %cst_48 : f32 to vector<8x1xf32>
      %c0_49 = arith.constant 0 : index
      %c0_50 = arith.constant 0 : index
      %82 = vector.load %arg8[%c0_49, %c0_50] : memref<8x1xf32, #tpu.memory_space<vmem>>, vector<8x1xf32>
      tpu.vector_store %arg8[%c0_49, %c0_50], %81 {strides = array<i32>} : memref<8x1xf32, #tpu.memory_space<vmem>>, vector<8x1xf32>,
    } else {
    }
    %c768_i32 = arith.constant 768 : i32
    %3 = arith.muli %arg0, %c768_i32 : i32
    %4 = tpu.assume_multiple %3, 128 : i32
    %c0 = arith.constant 0 : index
    %5 = arith.index_cast %4 : i32 to index
    %6 = vector.load %arg1[%c0, %5] : memref<8x1024xf32, #tpu.memory_space<vmem>>, vector<8x1024xf32>
    %cst = arith.constant 0.000000e+00 : f32
    %7 = vector.broadcast %cst : f32 to vector<8x768xf32>
    %8 = vector.extract_strided_slice %6 {offsets = [0, 109], sizes = [8, 768], strides = [1, 1]} : vector<8x1024xf32> to vector<8x768xf32>
    %c0_1 = arith.constant 0 : index
    %c0_2 = arith.constant 0 : index
    %c0_3 = arith.constant 0 : index
    %9 = vector.load %arg2[%c0_1, %c0_2, %c0_3] : memref<9x8x8xf32, #tpu.memory_space<vmem>>, vector<1x8x8xf32>
    %10 = vector.shape_cast %9 : vector<1x8x8xf32> to vector<8x8xf32>
    %cst_4 = arith.constant dense<0.000000e+00> : vector<8x768xf32>
    %11 = tpu.matmul %10, %8, %cst_4 {dimension_numbers = #tpu.dot_dimension_numbers<[1], [0], [0], [1], [0, 0, 1, 1], [], []>} : vector<8x8xf32>, vector<8x768xf32>, vector<8x768xf32> -> vector<8x768xf32>
    %12 = arith.addf %7, %11 : vector<8x768xf32>
    %13 = vector.extract_strided_slice %6 {offsets = [0, 110], sizes = [8, 768], strides = [1, 1]} : vector<8x1024xf32> to vector<8x768xf32>
    %c1 = arith.constant 1 : index
    %c0_5 = arith.constant 0 : index
    %c0_6 = arith.constant 0 : index
    %14 = vector.load %arg2[%c1, %c0_5, %c0_6] : memref<9x8x8xf32, #tpu.memory_space<vmem>>, vector<1x8x8xf32>
    %15 = vector.shape_cast %14 : vector<1x8x8xf32> to vector<8x8xf32>
    %cst_7 = arith.constant dense<0.000000e+00> : vector<8x768xf32>
    %16 = tpu.matmul %15, %13, %cst_7 {dimension_numbers = #tpu.dot_dimension_numbers<[1], [0], [0], [1], [0, 0, 1, 1], [], []>} : vector<8x8xf32>, vector<8x768xf32>, vector<8x768xf32> -> vector<8x768xf32>
    %17 = arith.addf %12, %16 : vector<8x768xf32>
    %18 = vector.extract_strided_slice %6 {offsets = [0, 111], sizes = [8, 768], strides = [1, 1]} : vector<8x1024xf32> to vector<8x768xf32>
    %c2 = arith.constant 2 : index
    %c0_8 = arith.constant 0 : index
    %c0_9 = arith.constant 0 : index
    %19 = vector.load %arg2[%c2, %c0_8, %c0_9] : memref<9x8x8xf32, #tpu.memory_space<vmem>>, vector<1x8x8xf32>
    %20 = vector.shape_cast %19 : vector<1x8x8xf32> to vector<8x8xf32>
    %cst_10 = arith.constant dense<0.000000e+00> : vector<8x768xf32>
    %21 = tpu.matmul %20, %18, %cst_10 {dimension_numbers = #tpu.dot_dimension_numbers<[1], [0], [0], [1], [0, 0, 1, 1], [], []>} : vector<8x8xf32>, vector<8x768xf32>, vector<8x768xf32> -> vector<8x768xf32>
    %22 = arith.addf %17, %21 : vector<8x768xf32>
    %23 = vector.extract_strided_slice %6 {offsets = [0, 127], sizes = [8, 768], strides = [1, 1]} : vector<8x1024xf32> to vector<8x768xf32>
    %c3 = arith.constant 3 : index
    %c0_11 = arith.constant 0 : index
    %c0_12 = arith.constant 0 : index
    %24 = vector.load %arg2[%c3, %c0_11, %c0_12] : memref<9x8x8xf32, #tpu.memory_space<vmem>>, vector<1x8x8xf32>
    %25 = vector.shape_cast %24 : vector<1x8x8xf32> to vector<8x8xf32>
    %cst_13 = arith.constant dense<0.000000e+00> : vector<8x768xf32>
    %26 = tpu.matmul %25, %23, %cst_13 {dimension_numbers = #tpu.dot_dimension_numbers<[1], [0], [0], [1], [0, 0, 1, 1], [], []>} : vector<8x8xf32>, vector<8x768xf32>, vector<8x768xf32> -> vector<8x768xf32>
    %27 = arith.addf %22, %26 : vector<8x768xf32>
    %28 = vector.extract_strided_slice %6 {offsets = [0, 128], sizes = [8, 768], strides = [1, 1]} : vector<8x1024xf32> to vector<8x768xf32>
    %c4 = arith.constant 4 : index
    %c0_14 = arith.constant 0 : index
    %c0_15 = arith.constant 0 : index
    %29 = vector.load %arg2[%c4, %c0_14, %c0_15] : memref<9x8x8xf32, #tpu.memory_space<vmem>>, vector<1x8x8xf32>
    %30 = vector.shape_cast %29 : vector<1x8x8xf32> to vector<8x8xf32>
    %cst_16 = arith.constant dense<0.000000e+00> : vector<8x768xf32>
    %31 = tpu.matmul %30, %28, %cst_16 {dimension_numbers = #tpu.dot_dimension_numbers<[1], [0], [0], [1], [0, 0, 1, 1], [], []>} : vector<8x8xf32>, vector<8x768xf32>, vector<8x768xf32> -> vector<8x768xf32>
    %32 = arith.addf %27, %31 : vector<8x768xf32>
    %33 = vector.extract_strided_slice %6 {offsets = [0, 129], sizes = [8, 768], strides = [1, 1]} : vector<8x1024xf32> to vector<8x768xf32>
    %c5 = arith.constant 5 : index
    %c0_17 = arith.constant 0 : index
    %c0_18 = arith.constant 0 : index
    %34 = vector.load %arg2[%c5, %c0_17, %c0_18] : memref<9x8x8xf32, #tpu.memory_space<vmem>>, vector<1x8x8xf32>
    %35 = vector.shape_cast %34 : vector<1x8x8xf32> to vector<8x8xf32>
    %cst_19 = arith.constant dense<0.000000e+00> : vector<8x768xf32>
    %36 = tpu.matmul %35, %33, %cst_19 {dimension_numbers = #tpu.dot_dimension_numbers<[1], [0], [0], [1], [0, 0, 1, 1], [], []>} : vector<8x8xf32>, vector<8x768xf32>, vector<8x768xf32> -> vector<8x768xf32>
    %37 = arith.addf %32, %36 : vector<8x768xf32>
    %38 = vector.extract_strided_slice %6 {offsets = [0, 145], sizes = [8, 768], strides = [1, 1]} : vector<8x1024xf32> to vector<8x768xf32>
    %c6 = arith.constant 6 : index
    %c0_20 = arith.constant 0 : index
    %c0_21 = arith.constant 0 : index
    %39 = vector.load %arg2[%c6, %c0_20, %c0_21] : memref<9x8x8xf32, #tpu.memory_space<vmem>>, vector<1x8x8xf32>
    %40 = vector.shape_cast %39 : vector<1x8x8xf32> to vector<8x8xf32>
    %cst_22 = arith.constant dense<0.000000e+00> : vector<8x768xf32>
    %41 = tpu.matmul %40, %38, %cst_22 {dimension_numbers = #tpu.dot_dimension_numbers<[1], [0], [0], [1], [0, 0, 1, 1], [], []>} : vector<8x8xf32>, vector<8x768xf32>, vector<8x768xf32> -> vector<8x768xf32>
    %42 = arith.addf %37, %41 : vector<8x768xf32>
    %43 = vector.extract_strided_slice %6 {offsets = [0, 146], sizes = [8, 768], strides = [1, 1]} : vector<8x1024xf32> to vector<8x768xf32>
    %c7 = arith.constant 7 : index
    %c0_23 = arith.constant 0 : index
    %c0_24 = arith.constant 0 : index
    %44 = vector.load %arg2[%c7, %c0_23, %c0_24] : memref<9x8x8xf32, #tpu.memory_space<vmem>>, vector<1x8x8xf32>
    %45 = vector.shape_cast %44 : vector<1x8x8xf32> to vector<8x8xf32>
    %cst_25 = arith.constant dense<0.000000e+00> : vector<8x768xf32>
    %46 = tpu.matmul %45, %43, %cst_25 {dimension_numbers = #tpu.dot_dimension_numbers<[1], [0], [0], [1], [0, 0, 1, 1], [], []>} : vector<8x8xf32>, vector<8x768xf32>, vector<8x768xf32> -> vector<8x768xf32>
    %47 = arith.addf %42, %46 : vector<8x768xf32>
    %48 = vector.extract_strided_slice %6 {offsets = [0, 147], sizes = [8, 768], strides = [1, 1]} : vector<8x1024xf32> to vector<8x768xf32>
    %c8 = arith.constant 8 : index
    %c0_26 = arith.constant 0 : index
    %c0_27 = arith.constant 0 : index
    %49 = vector.load %arg2[%c8, %c0_26, %c0_27] : memref<9x8x8xf32, #tpu.memory_space<vmem>>, vector<1x8x8xf32>
    %50 = vector.shape_cast %49 : vector<1x8x8xf32> to vector<8x8xf32>
    %cst_28 = arith.constant dense<0.000000e+00> : vector<8x768xf32>
    %51 = tpu.matmul %50, %48, %cst_28 {dimension_numbers = #tpu.dot_dimension_numbers<[1], [0], [0], [1], [0, 0, 1, 1], [], []>} : vector<8x8xf32>, vector<8x768xf32>, vector<8x768xf32> -> vector<8x768xf32>
    %52 = arith.addf %47, %51 : vector<8x768xf32>
    %c128_i32 = arith.constant 128 : i32
    %53 = arith.addi %4, %c128_i32 : i32
    %54 = tpu.assume_multiple %53, 128 : i32
    %c0_29 = arith.constant 0 : index
    %55 = arith.index_cast %54 : i32 to index
    %56 = vector.load %arg5[%c0_29, %55] : memref<1x1024xf32, #tpu.memory_space<vmem>>, vector<1x768xf32>
    %cst_30 = arith.constant 0.000000e+00 : f32
    %57 = vector.broadcast %cst_30 : f32 to vector<1x768xf32>
    %58 = arith.cmpf ogt, %56, %57 : vector<1x768xf32>
    %cst_31 = arith.constant 0.000000e+00 : f32
    %59 = vector.shape_cast %58 : vector<1x768xi1> to vector<1x768xi1>
    %60 = vector.broadcast %59 : vector<1x768xi1> to vector<8x768xi1>
    %61 = vector.broadcast %cst_31 : f32 to vector<8x768xf32>
    %62 = arith.select %60, %52, %61 : vector<8x768xi1>, vector<8x768xf32>
    %c0_32 = arith.constant 0 : index
    %c0_33 = arith.constant 0 : index
    %63 = vector.load %arg7[%c0_32, %c0_33] : memref<8x1xf32, #tpu.memory_space<vmem>>, vector<8x1xf32>
    %cst_34 = arith.constant dense<0.000000e+00> : vector<8xf32>
    %64 = vector.multi_reduction <add>, %62, %cst_34 [1] : vector<8x768xf32> to vector<8xf32>
    %65 = vector.shape_cast %64 : vector<8xf32> to vector<8x1xf32>
    %66 = arith.addf %63, %65 : vector<8x1xf32>
    %c0_35 = arith.constant 0 : index
    %c0_36 = arith.constant 0 : index
    %67 = vector.load %arg7[%c0_35, %c0_36] : memref<8x1xf32, #tpu.memory_space<vmem>>, vector<8x1xf32>
    tpu.vector_store %arg7[%c0_35, %c0_36], %66 {strides = array<i32>} : memref<8x1xf32, #tpu.memory_space<vmem>>, vector<8x1xf32>,
    %c0_37 = arith.constant 0 : index
    %c0_38 = arith.constant 0 : index
    %68 = vector.load %arg8[%c0_37, %c0_38] : memref<8x1xf32, #tpu.memory_space<vmem>>, vector<8x1xf32>
    %69 = arith.mulf %62, %62 : vector<8x768xf32>
    %cst_39 = arith.constant dense<0.000000e+00> : vector<8xf32>
    %70 = vector.multi_reduction <add>, %69, %cst_39 [1] : vector<8x768xf32> to vector<8xf32>
    %71 = vector.shape_cast %70 : vector<8xf32> to vector<8x1xf32>
    %72 = arith.addf %68, %71 : vector<8x1xf32>
    %c0_40 = arith.constant 0 : index
    %c0_41 = arith.constant 0 : index
    %73 = vector.load %arg8[%c0_40, %c0_41] : memref<8x1xf32, #tpu.memory_space<vmem>>, vector<8x1xf32>
    tpu.vector_store %arg8[%c0_40, %c0_41], %72 {strides = array<i32>} : memref<8x1xf32, #tpu.memory_space<vmem>>, vector<8x1xf32>,
    %c0_42 = arith.constant 0 : index
    %74 = arith.index_cast %54 : i32 to index
    %75 = vector.load %arg6[%c0_42, %74] : memref<8x1024xf32, #tpu.memory_space<vmem>>, vector<8x768xf32>
    tpu.vector_store %arg6[%c0_42, %74], %52 {strides = array<i32>} : memref<8x1024xf32, #tpu.memory_space<vmem>>, vector<8x768xf32>,
    %c0_i32_43 = arith.constant 0 : i32
    %76 = arith.cmpi eq, %arg0, %c0_i32_43 : i32
    %77 = arith.extui %76 : i1 to i32
    %c0_i32_44 = arith.constant 0 : i32
    %78 = arith.cmpi ne, %77, %c0_i32_44 : i32
    scf.if %78 {
      %c0_45 = arith.constant 0 : index
      %c0_46 = arith.constant 0 : index
      %79 = vector.load %arg7[%c0_45, %c0_46] : memref<8x1xf32, #tpu.memory_space<vmem>>, vector<8x1xf32>
      %cst_47 = arith.constant 0.001953125 : f32
      %80 = vector.broadcast %cst_47 : f32 to vector<8x1xf32>
      %81 = arith.mulf %79, %80 : vector<8x1xf32>
      %c0_48 = arith.constant 0 : index
      %c0_49 = arith.constant 0 : index
      %82 = vector.load %arg8[%c0_48, %c0_49] : memref<8x1xf32, #tpu.memory_space<vmem>>, vector<8x1xf32>
      %cst_50 = arith.constant 0.001953125 : f32
      %83 = vector.broadcast %cst_50 : f32 to vector<8x1xf32>
      %84 = arith.mulf %82, %83 : vector<8x1xf32>
      %85 = arith.mulf %81, %81 : vector<8x1xf32>
      %86 = arith.subf %84, %85 : vector<8x1xf32>
      %cst_51 = arith.constant 0.000000e+00 : f32
      %87 = vector.broadcast %cst_51 : f32 to vector<8x1xf32>
      %88 = arith.maximumf %86, %87 : vector<8x1xf32>
      %c0_52 = arith.constant 0 : index
      %c0_53 = arith.constant 0 : index
      %89 = vector.load %arg3[%c0_52, %c0_53] : memref<8x1xf32, #tpu.memory_space<vmem>>, vector<8x1xf32>
      %cst_54 = arith.constant 9.99999974E-6 : f32
      %90 = vector.broadcast %cst_54 : f32 to vector<8x1xf32>
      %91 = arith.addf %88, %90 : vector<8x1xf32>
      %92 = math.rsqrt %91 : vector<8x1xf32>
      %93 = arith.mulf %89, %92 : vector<8x1xf32>
      %c0_55 = arith.constant 0 : index
      %c0_56 = arith.constant 0 : index
      %94 = vector.load %arg4[%c0_55, %c0_56] : memref<8x1xf32, #tpu.memory_space<vmem>>, vector<8x1xf32>
      %95 = arith.mulf %81, %93 : vector<8x1xf32>
      %96 = arith.subf %94, %95 : vector<8x1xf32>
      %c0_i32_57 = arith.constant 0 : i32
      %c1024_i32 = arith.constant 1024 : i32
      %97 = arith.muli %c0_i32_57, %c1024_i32 : i32
      %98 = tpu.assume_multiple %97, 128 : i32
      %c0_58 = arith.constant 0 : index
      %99 = arith.index_cast %98 : i32 to index
      %100 = vector.load %arg6[%c0_58, %99] : memref<8x1024xf32, #tpu.memory_space<vmem>>, vector<8x1024xf32>
      %c0_59 = arith.constant 0 : index
      %101 = arith.index_cast %98 : i32 to index
      %102 = vector.load %arg5[%c0_59, %101] : memref<1x1024xf32, #tpu.memory_space<vmem>>, vector<1x1024xf32>
      %103 = vector.broadcast %93 : vector<8x1xf32> to vector<8x1024xf32>
      %104 = arith.mulf %100, %103 : vector<8x1024xf32>
      %105 = vector.broadcast %96 : vector<8x1xf32> to vector<8x1024xf32>
      %106 = arith.addf %104, %105 : vector<8x1024xf32>
      %cst_60 = arith.constant 0.000000e+00 : f32
      %107 = vector.broadcast %cst_60 : f32 to vector<8x1024xf32>
      %108 = arith.maximumf %106, %107 : vector<8x1024xf32>
      %cst_61 = arith.constant 0.000000e+00 : f32
      %109 = vector.broadcast %cst_61 : f32 to vector<1x1024xf32>
      %110 = arith.cmpf ogt, %102, %109 : vector<1x1024xf32>
      %cst_62 = arith.constant 0.000000e+00 : f32
      %111 = vector.shape_cast %110 : vector<1x1024xi1> to vector<1x1024xi1>
      %112 = vector.broadcast %111 : vector<1x1024xi1> to vector<8x1024xi1>
      %113 = vector.broadcast %cst_62 : f32 to vector<8x1024xf32>
      %114 = arith.select %112, %108, %113 : vector<8x1024xi1>, vector<8x1024xf32>
      %c0_63 = arith.constant 0 : index
      %115 = arith.index_cast %98 : i32 to index
      %116 = vector.load %arg6[%c0_63, %115] : memref<8x1024xf32, #tpu.memory_space<vmem>>, vector<8x1024xf32>
      tpu.vector_store %arg6[%c0_63, %115], %114 {strides = array<i32>} : memref<8x1024xf32, #tpu.memory_space<vmem>>, vector<8x1024xf32>,
      %c1_i32 = arith.constant 1 : i32
    } else {
    }
    return
  }
  func.func @transform_0(%arg0: i32) -> (i32, i32) {
    %c0_i32 = arith.constant 0 : i32
    %c0_i32_0 = arith.constant 0 : i32
    %c0_i32_1 = arith.constant 0 : i32
    return %c0_i32, %c0_i32_0 : i32, i32
  }
  func.func @transform_1(%arg0: i32) -> (i32, i32, i32) {
    %c0_i32 = arith.constant 0 : i32
    %c0_i32_0 = arith.constant 0 : i32
    %c0_i32_1 = arith.constant 0 : i32
    %c0_i32_2 = arith.constant 0 : i32
    return %c0_i32, %c0_i32_0, %c0_i32_1 : i32, i32, i32
  }
  func.func @transform_2(%arg0: i32) -> (i32, i32) {
    %c0_i32 = arith.constant 0 : i32
    %c0_i32_0 = arith.constant 0 : i32
    %c0_i32_1 = arith.constant 0 : i32
    return %c0_i32, %c0_i32_0 : i32, i32
  }
  func.func @transform_3(%arg0: i32) -> (i32, i32) {
    %c0_i32 = arith.constant 0 : i32
    %c0_i32_0 = arith.constant 0 : i32
    %c0_i32_1 = arith.constant 0 : i32
    return %c0_i32, %c0_i32_0 : i32, i32
  }
  func.func @transform_4(%arg0: i32) -> (i32, i32) {
    %c0_i32 = arith.constant 0 : i32
    %c0_i32_0 = arith.constant 0 : i32
    %c0_i32_1 = arith.constant 0 : i32
    return %c0_i32, %c0_i32_0 : i32, i32
  }
  func.func @transform_5(%arg0: i32) -> (i32, i32) {
    %c0_i32 = arith.constant 0 : i32
    %c0_i32_0 = arith.constant 0 : i32
    %c0_i32_1 = arith.constant 0 : i32
    return %c0_i32, %c0_i32_0 : i32, i32
  }
}

</mosaic_0001>

<bundles_post_ra>
// kernel: tile.5
= control target key start
LH: loop header
LB: loop body
LE: loop exit
PB: predicated region body
PF: predicated region fallthrough
CT: control target
= control target key end

     0   :  { %vm9_vm0 = vcmask 15360   ;;  %vm22_vm1 = vcmask 31744   ;;  %s173_s14 = smov 126   ;;  %s174_s15 = smov 108   ;;  %vm3_vm2 = vcmask 146432   ;;  %vm13_vm3 = vcmask 130048   ;;  %s263_s0 = inlined_call_operand.vmem [shape: f32[18,18], index: 0, kind: input, shape index: {}]   ;;  %s264_s1 = inlined_call_operand.vmem [shape: f32[324], index: 1, kind: output, shape index: {}]  }
   0x1   :  { %v137_v0 = vld [vmem:[%s263_s0 + $0x7] sm:$0x1]   ;;  %v141_v3 = vld [vmem:[%s263_s0 + $0x6] sm:$0x1]   ;;  %v139_v4 = vld [vmem:[%s263_s0 + $0xe] sm:$0x1]  }
   0x2   :  { %v138_v1 = vld [vmem:[%s263_s0 + $0x7] sm:$0x1]   ;;  %34 = vrot.lane.b32.xlu1 %v141_v3, %s174_s15  ;;  %v140_v5 = vld [vmem:[%s263_s0 + $0xe] sm:$0x1]   ;;  %v142_v7 = vld [vmem:[%s263_s0 + $0xd] sm:$0x1]  }
   0x3   :  { %v10_v2 = vsel %vm9_vm0, %v138_v1, %v137_v0  ;;  %v23_v6 = vsel %vm22_vm1, %v140_v5, %v139_v4  ;;  %s175_s20 = smov 124   ;;  %s176_s21 = smov 106   ;;  %v143_v8 = vld [vmem:[%s263_s0 + $0x5] sm:$0x1]   ;;  %v144_v9 = vld [vmem:[%s263_s0 + $0xc] sm:$0x1]  }
   0x4   :  { %11 = vrot.lane.b32.xlu0 %v10_v2, %s173_s14  ;;  %s177_s26 = smov 90   ;;  %s178_s27 = smov 88   ;;  %v2_v10 = vld [vmem:[%s263_s0] sm:$0x1]   ;;  %v145_v11 = vld [vmem:[%s263_s0 + $0x4] sm:$0x1]  }
   0x5   :  { %v146_v12 = vld [vmem:[%s263_s0 + $0xb] sm:$0x1]   ;;  %4 = vst.msk [vmem:[#allocation0] sm:$0x1] %vm3_vm2, %v2_v10   ;;  %s179_s5 = smov 72   ;;  %s180_s6 = smov 70  }
   0x6   :  { %40 = vrot.lane.b32.xlu1 %v142_v7, %s176_s21  ;;  %v147_v13 = vld [vmem:[%s263_s0 + $0x3] sm:$0x1]   ;;  %v148_v14 = vld [vmem:[%s263_s0 + $0xa] sm:$0x1]   ;;  %s181_s11 = smov 54   ;;  %s182_s12 = smov 52  }
   0x7   :  { %v149_v15 = vld [vmem:[%s263_s0 + $0x11] sm:$0x1]   ;;  %v150_v16 = vld [vmem:[%s263_s0 + $0x2] sm:$0x1]   ;;  %s183_s17 = smov 50   ;;  %s184_s18 = smov 36  }
   0x8   :  { %24 = vrot.lane.b32.xlu0 %v23_v6, %s175_s20  ;;  %v151_v17 = vld [vmem:[%s263_s0 + $0x9] sm:$0x1]   ;;  %v152_v18 = vld [vmem:[%s263_s0 + $0x10] sm:$0x1]   ;;  %s185_s23 = smov 34   ;;  %s186_s24 = smov 32  }
   0x9   :  { %v153_v19 = vld [vmem:[%s263_s0 + $0x1] sm:$0x1]   ;;  %v154_v20 = vld [vmem:[%s263_s0 + $0x8] sm:$0x1]   ;;  %s187_s29 = smov 18   ;;  %s188_s30 = smov 16  }
   0xa   :  { %53 = vrot.lane.b32.xlu1 %v144_v9, %s178_s27  ;;  %v155_v21 = vld [vmem:[%s263_s0 + $0xf] sm:$0x1]   ;;  %s189_s0 = smov 14   ;;  %vm16_vm4 = vcmask 1048560   ;;  %vm36_vm5 = vcmask 1032032   ;;  %vm26_vm6 = vcmask 113664  }
   0xb   :  { %vm29_vm7 = vcmask 1048544   ;;  %vm42_vm8 = vcmask 1015632   ;;  %vm49_vm9 = vcmask 884432   ;;  %vm55_vm10 = vcmask 868032  }
   0xc   :  { %47 = vrot.lane.b32.xlu0 %v143_v8, %s177_s26  ;;  %vm62_vm11 = vcmask 736832   ;;  %vm68_vm12 = vcmask 720432   ;;  %vm75_vm13 = vcmask 589232   ;;  %vm81_vm14 = vcmask 572832  }
   0xd   :  { %vm88_vm15 = vcmask 556432   ;;  %vm95_vm0 = vcmask 441632   ;;  %vm101_vm1 = vcmask 425232   ;;  %vm108_vm2 = vcmask 408832  }
   0xe   :  { %66 = vrot.lane.b32.xlu1 %v146_v12, %s180_s6 }
  0x10   :  { %60 = vrot.lane.b32.xlu0 %v145_v11, %s179_s5 }
  0x12   :  { %79 = vrot.lane.b32.xlu1 %v148_v14, %s182_s12 }
  0x14   :  { %73 = vrot.lane.b32.xlu0 %v147_v13, %s181_s11 }
  0x16   :  { %93 = vrot.lane.b32.xlu1 %v150_v16, %s184_s18 }
  0x18   :  { %86 = vrot.lane.b32.xlu0 %v149_v15, %s183_s17 }
  0x1a   :  { %106 = vrot.lane.b32.xlu1 %v152_v18, %s186_s24 }
  0x1c   :  { %99 = vrot.lane.b32.xlu0 %v151_v17, %s185_s23 }
  0x1e   :  { %119 = vrot.lane.b32.xlu1 %v154_v20, %s188_s30 }
  0x20   :  { %113 = vrot.lane.b32.xlu0 %v153_v19, %s187_s29 }
  0x24   :  { %126 = vrot.lane.b32.xlu0 %v155_v21, %s189_s0 }
  0x74   :  { %v35_v23 = vpop.permute.xlu1 %34  }
  0x76   :  { %v12_v22 = vpop.permute.xlu0 %11  }
  0x77   :  { %15 = vst.msk [vmem:[#allocation0 + $0x1] sm:$0x1] %vm13_vm3, %v12_v22   ;;  %vm115_vm3 = vcmask 294032  }
  0x78   :  { %17 = vst.msk [vmem:[#allocation0] sm:$0x1] %vm16_vm4, %v12_v22   ;;  %v41_v25 = vpop.permute.xlu1 %40   ;;  %vm121_vm4 = vcmask 277632  }
  0x79   :  { %37 = vst.msk [vmem:[#allocation0] sm:$0x1] %vm36_vm5, %v35_v23   ;;  %vm128_vm5 = vcmask 261232  }
  0x7a   :  { %v25_v24 = vpop.permute.xlu0 %24  }
  0x7b   :  { %28 = vst.msk [vmem:[#allocation0 + $0x2] sm:$0x1] %vm26_vm6, %v25_v24  }
  0x7c   :  { %31 = vst.msk [vmem:[#allocation0 + $0x1] sm:$0x1] %vm29_vm7, %v25_v24   ;;  %v54_v27 = vpop.permute.xlu1 %53  }
  0x7d   :  { %44 = vst.msk [vmem:[#allocation0 + $0x1] sm:$0x1] %vm42_vm8, %v41_v25  }
  0x7e   :  { %v48_v26 = vpop.permute.xlu0 %47   ;;  %57 = vst.msk [vmem:[#allocation0 + $0x1] sm:$0x1] %vm55_vm10, %v54_v27  }
  0x7f   :  { %50 = vst.msk [vmem:[#allocation0] sm:$0x1] %vm49_vm9, %v48_v26  }
  0x80   :  { %v67_v29 = vpop.permute.xlu1 %66  }
  0x81   :  { %70 = vst.msk [vmem:[#allocation0 + $0x1] sm:$0x1] %vm68_vm12, %v67_v29  }
  0x82   :  { %v61_v28 = vpop.permute.xlu0 %60  }
  0x83   :  { %63 = vst.msk [vmem:[#allocation0] sm:$0x1] %vm62_vm11, %v61_v28  }
  0x84   :  { %v80_v31 = vpop.permute.xlu1 %79  }
  0x85   :  { %83 = vst.msk [vmem:[#allocation0 + $0x1] sm:$0x1] %vm81_vm14, %v80_v31  }
  0x86   :  { %v74_v30 = vpop.permute.xlu0 %73  }
  0x87   :  { %76 = vst.msk [vmem:[#allocation0] sm:$0x1] %vm75_vm13, %v74_v30  }
  0x88   :  { %v94_v33 = vpop.permute.xlu1 %93  }
  0x89   :  { %96 = vst.msk [vmem:[#allocation0] sm:$0x1] %vm95_vm0, %v94_v33  }
  0x8a   :  { %v87_v32 = vpop.permute.xlu0 %86  }
  0x8b   :  { %90 = vst.msk [vmem:[#allocation0 + $0x2] sm:$0x1] %vm88_vm15, %v87_v32  }
  0x8c   :  { %v107_v35 = vpop.permute.xlu1 %106  }
  0x8d   :  { %110 = vst.msk [vmem:[#allocation0 + $0x2] sm:$0x1] %vm108_vm2, %v107_v35  }
  0x8e   :  { %v100_v34 = vpop.permute.xlu0 %99  }
  0x8f   :  { %103 = vst.msk [vmem:[#allocation0 + $0x1] sm:$0x1] %vm101_vm1, %v100_v34  }
  0x90   :  { %v120_v37 = vpop.permute.xlu1 %119  }
  0x91   :  { %123 = vst.msk [vmem:[#allocation0 + $0x1] sm:$0x1] %vm121_vm4, %v120_v37  }
  0x92   :  { %v114_v36 = vpop.permute.xlu0 %113  }
  0x93   :  { %116 = vst.msk [vmem:[#allocation0] sm:$0x1] %vm115_vm3, %v114_v36  }
  0x96   :  { %v127_v38 = vpop.permute.xlu0 %126  }
  0x97   :  { %130 = vst.msk [vmem:[#allocation0 + $0x2] sm:$0x1] %vm128_vm5, %v127_v38  }
  0x9e   :  { %v134_v39 = vld [vmem:[#allocation0] sm:$0xf] }
  0x9f   :  { %136 = vst [vmem:[%s264_s1] sm:$0xf] %v134_v39 }

// kernel: tile.7
= control target key start
LH: loop header
LB: loop body
LE: loop exit
PB: predicated region body
PF: predicated region fallthrough
CT: control target
= control target key end

     0   :  { %vm30_vm0 = vcmask 1042434   ;;  %s20_s12 = smov 3  ;;  %vm32_vm1 = vcmask 490496   ;;  %vm17_vm2 = vcmask 556032   ;;  %s45_s13 = smov 3  ;;  %vm36_vm3 = vcmask 64512   ;;  %s140_s0 = inlined_call_operand.vmem [shape: f32[2,324], index: 0, kind: input, shape index: {}]   ;;  %s141_s1 = inlined_call_operand.vmem [shape: f32[1,648], index: 1, kind: output, shape index: {}]  }
   0x1   :  { %v92_v0 = vld [vmem:[%s140_s0 + $0x4] sm:$0x3]  ;;  %v93_v1 = vld [vmem:[%s140_s0 + $0x2] sm:$0x3]  ;;  %v13_v2 = vld [vmem:[%s140_s0] sm:$0x3] }
   0x2   :  { %8 = vst [vmem:[#allocation1 + $0x10] sm:$0x3] %v92_v0  ;;  %12 = vst [vmem:[#allocation1 + $0x8] sm:$0x3] %v93_v1  ;;  %s26_s0 = smov 3  ;;  %s100_s14 = smov 68  }
   0x3   :  { %14 = vst [vmem:[#allocation1] sm:$0x3] %v13_v2  ;;  %vm39_vm4 = vcmask 1048096  }
   0x9   :  { %v24_v3 = vld [vmem:[#allocation1 + $0x11] sm:$0x1]   ;;  %v29_v5 = vld [vmem:[#allocation1 + $0x7] sm:$0x4]   ;;  %v16_v8 = vld [vmem:[#allocation1 + $0x10] sm:$0x1]  }
   0xa   :  { %v27_v4 = vld [vmem:[#allocation1 + $0x11] ss:$-16 sm:%s26_s0]   ;;  %v21_v7 = vld [vmem:[#allocation1] ss:$8 sm:%s20_s12]   ;;  %19 = vst.msk [vmem:[#allocation0 + $0x10] sm:$0x1] %vm17_vm2, %v16_v8  }
   0xb   :  { %v31_v6 = vsel %vm30_vm0, %v29_v5, %v27_v4  ;;  %22 = vst [vmem:[#allocation0] ss:$8 sm:$0x3] %v21_v7   ;;  %v46_v10 = vld [vmem:[#allocation1 + $0x9] ss:$-8 sm:%s45_s13]  }
   0xc   :  { %v33_v9 = vsel %vm32_vm1, %v31_v6, %v24_v3 }
   0xd   :  { %34 = vrot.lane.b32.xlu0 %v33_v9, %s100_s14 }
  0x11   :  { %47 = vrot.lane.b32.xlu0 %v46_v10, %s100_s14 }
  0x12   :  { %v55_v11 = vld [vmem:[#allocation0] sm:$0x1]  ;;  %v59_v12 = vld [vmem:[#allocation0 + $0x8] sm:$0x1] }
  0x13   :  { %57 = vst [vmem:[%s141_s1] sm:$0x1] %v55_v11  ;;  %94 = vst [vmem:[%s141_s1 + $0x1] sm:$0x1] %v59_v12 }
  0x7f   :  { %v35_v13 = vpop.permute.xlu0 %34  }
  0x80   :  { %38 = vst.msk [vmem:[#allocation0 + $0x28] sm:$0x1] %vm36_vm3, %v35_v13  }
  0x81   :  { %41 = vst.msk [vmem:[#allocation0 + $0x20] ss:$-16 sm:$0x3] %vm39_vm4, %v35_v13   ;;  %43 = vst.msk [vmem:[#allocation0 + $0x16] sm:$0x4] %vm39_vm4, %v35_v13  }
  0x83   :  { %v48_v14 = vpop.permute.xlu0 %47  }
  0x84   :  { %51 = vst.msk [vmem:[#allocation0 + $0x20] ss:$-8 sm:$0x3] %vm17_vm2, %v48_v14  }
  0x87   :  { %v82_v16 = vld [vmem:[#allocation0 + $0x28] sm:$0x1] }
  0x88   :  { %v64_v15 = vld [vmem:[#allocation0 + $0x10] sm:$0x1]  ;;  %98 = vst [vmem:[%s141_s1 + $0x5] sm:$0x1] %v82_v16 }
  0x89   :  { %95 = vst [vmem:[%s141_s1 + $0x2] sm:$0x1] %v64_v15 }
  0x8b   :  { %v70_v17 = vld [vmem:[#allocation0 + $0x18] sm:$0x1]  ;;  %v76_v18 = vld [vmem:[#allocation0 + $0x20] sm:$0x1] }
  0x8c   :  { %96 = vst [vmem:[%s141_s1 + $0x3] sm:$0x1] %v70_v17  ;;  %97 = vst [vmem:[%s141_s1 + $0x4] sm:$0x1] %v76_v18 }

// kernel: tile.6
= control target key start
LH: loop header
LB: loop body
LE: loop exit
PB: predicated region body
PF: predicated region fallthrough
CT: control target
= control target key end

     0   :  { %s46_s0 = inlined_call_operand.vmem [shape: f32[324], index: 0, kind: input, shape index: {}]   ;;  %s47_s1 = inlined_call_operand.vmem [shape: f32[2,324], index: 1, kind: output, shape index: {}]  }
   0x1   :  { %v4_v0 = vld [vmem:[%s46_s0] ss:$0 sm:$0xff]  ;;  %v14_v1 = vld [vmem:[%s46_s0 + $0x1] ss:$0 sm:$0xff]  ;;  %v16_v2 = vld [vmem:[%s46_s0 + $0x2] ss:$0 sm:$0xff] }
   0x2   :  { %5 = vst [vmem:[%s47_s1] sm:$0x3] %v4_v0  ;;  %15 = vst [vmem:[%s47_s1 + $0x2] sm:$0x3] %v14_v1 }
   0x3   :  { %17 = vst [vmem:[%s47_s1 + $0x4] sm:$0x3] %v16_v2 }

// kernel: conv_block_forward.3
= control target key start
LH: loop header
LB: loop body
LE: loop exit
PB: predicated region body
PF: predicated region fallthrough
CT: control target
= control target key end

     0   :  { %v2576_v2 = vmov 0.0   ;;  %s2577_s22 = smov 18   ;;  %s2578_s8 = smov 19   ;;  %vm24_vm0 = vcmask 7168   ;;  %vm64_vm1 = vcmask 146432   ;;  %vm77_vm2 = vcmask 64512   ;;  %s2951_s0 = inlined_call_operand.vmem [shape: f32[8,1024], index: 0, kind: input, shape index: {}]   ;;  %s2952_s1 = inlined_call_operand.vmem [shape: f32[9,8,8], index: 1, kind: input, shape index: {}]   ;;  %s2953_s4 = inlined_call_operand.vmem [shape: f32[1,1024], index: 4, kind: input, shape index: {}]   ;;  %s2954_s2 = inlined_call_operand.vmem [shape: f32[8,1], index: 2, kind: input, shape index: {}]   ;;  %s2955_s3 = inlined_call_operand.vmem [shape: f32[8,1], index: 3, kind: input, shape index: {}]   ;;  %s2956_s5 = inlined_call_operand.vmem [shape: f32[8,1024], index: 5, kind: output, shape index: {}]  }
   0x1   :  { %v2619_v0 = vld [vmem:[%s2951_s0 + $0x8] sm:$0xff]  ;;  %v32_v1 = vld [vmem:[%s2951_s0] sm:$0xff]  ;;  %145 = vmatprep.mubr.f32.mxu1 %v2576_v2  ;;  %633 = vmatprep.mubr.f32.mxu0 %v2576_v2  ;;  %v2630_v3 = vld [vmem:[%s2951_s0 + $0x10] sm:$0xff]  ;;  %s2579_s9 = smov 17   ;;  %25 = vst.msk [vmem:[#allocation2] sm:$0xff] %vm24_vm0, %v2576_v2  ;;  %s2580_s10 = smov 1  }
   0x2   :  { %52 = vrot.lane.b32.xlu0 %v2619_v0, %s2577_s22  ;;  %50 = vrot.lane.b32.xlu1 %v32_v1, %s2577_s22  ;;  %v2635_v4 = vld [vmem:[%s2951_s0 + $0x18] sm:$0xff]  ;;  %v2642_v5 = vld [vmem:[%s2951_s0 + $0x20] sm:$0xff]  ;;  %26 = vst.msk [vmem:[#allocation3] sm:$0xff] %vm24_vm0, %v2576_v2  ;;  %s2581_s11 = smov 127   ;;  %s2582_s14 = smov 111   ;;  %vm308_vm3 = vcmask 154624  }
   0x3   :  { %v2647_v6 = vld [vmem:[%s2951_s0 + $0x28] sm:$0xff]  ;;  %v2654_v7 = vld [vmem:[%s2951_s0 + $0x30] sm:$0xff]  ;;  %v39_v8 = vld [vmem:[%s2951_s0 + $0x38] sm:$0xff]  ;;  %s2583_s0 = smov 110   ;;  %s2584_s15 = smov 109   ;;  %vm553_vm4 = vcmask 138240  }
   0x4   :  { %v2472_v14 = vld [vmem:[%s2952_s1 + $0x8] sm:$0xff]  ;;  %v40_v28 = vld [vmem:[%s2952_s1] sm:$0xff]  ;;  %v2479_v42 = vld [vmem:[%s2952_s1 + $0x10] sm:$0xff]  ;;  %vm1280_vm5 = vcmask 1039360   ;;  %vm1531_vm6 = vcmask 908288   ;;  %vm1782_vm7 = vcmask 900096  }
   0x5   :  { %v2483_v56 = vld [vmem:[%s2952_s1 + $0x18] sm:$0xff]  ;;  %vm2033_vm8 = vcmask 891904  }
   0x6   :  { %54 = vrot.lane.b32.xlu0 %v2630_v3, %s2577_s22  ;;  %56 = vrot.lane.b32.xlu1 %v2635_v4, %s2577_s22 }
   0xa   :  { %58 = vrot.lane.b32.xlu0 %v2642_v5, %s2577_s22  ;;  %60 = vrot.lane.b32.xlu1 %v2647_v6, %s2577_s22 }
   0xe   :  { %62 = vrot.lane.b32.xlu0 %v2654_v7, %s2577_s22  ;;  %296 = vrot.lane.b32.xlu1 %v2619_v0, %s2578_s8 }
  0x12   :  { %298 = vrot.lane.b32.xlu0 %v2630_v3, %s2578_s8  ;;  %294 = vrot.lane.b32.xlu1 %v32_v1, %s2578_s8 }
  0x16   :  { %300 = vrot.lane.b32.xlu0 %v2635_v4, %s2578_s8  ;;  %302 = vrot.lane.b32.xlu1 %v2642_v5, %s2578_s8 }
  0x1a   :  { %541 = vrot.lane.b32.xlu0 %v2619_v0, %s2579_s9  ;;  %543 = vrot.lane.b32.xlu1 %v2630_v3, %s2579_s9 }
  0x1e   :  { %304 = vrot.lane.b32.xlu0 %v2647_v6, %s2578_s8  ;;  %306 = vrot.lane.b32.xlu1 %v2654_v7, %s2578_s8 }
  0x22   :  { %539 = vrot.lane.b32.xlu0 %v32_v1, %s2579_s9  ;;  %549 = vrot.lane.b32.xlu1 %v2647_v6, %s2579_s9 }
  0x26   :  { %551 = vrot.lane.b32.xlu0 %v2654_v7, %s2579_s9  ;;  %545 = vrot.lane.b32.xlu1 %v2635_v4, %s2579_s9 }
  0x2a   :  { %547 = vrot.lane.b32.xlu0 %v2642_v5, %s2579_s9  ;;  %792 = vrot.lane.b32.xlu1 %v2619_v0, %s2580_s10 }
  0x2e   :  { %794 = vrot.lane.b32.xlu0 %v2630_v3, %s2580_s10  ;;  %790 = vrot.lane.b32.xlu1 %v32_v1, %s2580_s10 }
  0x32   :  { %800 = vrot.lane.b32.xlu0 %v2647_v6, %s2580_s10  ;;  %802 = vrot.lane.b32.xlu1 %v2654_v7, %s2580_s10 }
  0x36   :  { %796 = vrot.lane.b32.xlu0 %v2635_v4, %s2580_s10  ;;  %798 = vrot.lane.b32.xlu1 %v2642_v5, %s2580_s10 }
  0x3a   :  { %1268 = vrot.lane.b32.xlu0 %v2630_v3, %s2581_s11  ;;  %1270 = vrot.lane.b32.xlu1 %v2635_v4, %s2581_s11 }
  0x3e   :  { %1266 = vrot.lane.b32.xlu0 %v2619_v0, %s2581_s11  ;;  %1276 = vrot.lane.b32.xlu1 %v2654_v7, %s2581_s11 }
  0x42   :  { %1278 = vrot.lane.b32.xlu0 %v39_v8, %s2581_s11  ;;  %1272 = vrot.lane.b32.xlu1 %v2642_v5, %s2581_s11 }
  0x46   :  { %1274 = vrot.lane.b32.xlu0 %v2647_v6, %s2581_s11  ;;  %1519 = vrot.lane.b32.xlu1 %v2630_v3, %s2582_s14 }
  0x4a   :  { %1521 = vrot.lane.b32.xlu0 %v2635_v4, %s2582_s14  ;;  %1517 = vrot.lane.b32.xlu1 %v2619_v0, %s2582_s14 }
  0x4e   :  { %1527 = vrot.lane.b32.xlu0 %v2654_v7, %s2582_s14  ;;  %1529 = vrot.lane.b32.xlu1 %v39_v8, %s2582_s14 }
  0x52   :  { %1523 = vrot.lane.b32.xlu0 %v2642_v5, %s2582_s14  ;;  %1525 = vrot.lane.b32.xlu1 %v2647_v6, %s2582_s14 }
  0x56   :  { %1770 = vrot.lane.b32.xlu0 %v2630_v3, %s2583_s0  ;;  %1772 = vrot.lane.b32.xlu1 %v2635_v4, %s2583_s0 }
  0x5a   :  { %1768 = vrot.lane.b32.xlu0 %v2619_v0, %s2583_s0  ;;  %1778 = vrot.lane.b32.xlu1 %v2654_v7, %s2583_s0 }
  0x5e   :  { %1780 = vrot.lane.b32.xlu0 %v39_v8, %s2583_s0  ;;  %1774 = vrot.lane.b32.xlu1 %v2642_v5, %s2583_s0 }
  0x62   :  { %1776 = vrot.lane.b32.xlu0 %v2647_v6, %s2583_s0  ;;  %2021 = vrot.lane.b32.xlu1 %v2630_v3, %s2584_s15 }
  0x66   :  { %2023 = vrot.lane.b32.xlu0 %v2635_v4, %s2584_s15  ;;  %2019 = vrot.lane.b32.xlu1 %v2619_v0, %s2584_s15 }
  0x6a   :  { %2025 = vrot.lane.b32.xlu0 %v2642_v5, %s2584_s15  ;;  %2027 = vrot.lane.b32.xlu1 %v2647_v6, %s2584_s15 }
  0x6e   :  { %2029 = vrot.lane.b32.xlu0 %v2654_v7, %s2584_s15  ;;  %2031 = vrot.lane.b32.xlu1 %v39_v8, %s2584_s15 }
  0x74   :  { %v53_v9 = vpop.permute.xlu0 %52  ;;  %v51_v10 = vpop.permute.xlu1 %50 }
  0x75   :  { %v65_v15 = vsel %vm64_vm1, %v51_v10, %v53_v9  ;;  %v2487_v10 = vld [vmem:[%s2952_s1 + $0x20] sm:$0xff] }
  0x78   :  { %v55_v11 = vpop.permute.xlu0 %54  ;;  %v57_v12 = vpop.permute.xlu1 %56 }
  0x79   :  { %v66_v13 = vsel %vm64_vm1, %v53_v9, %v55_v11  ;;  %v67_v19 = vsel %vm64_vm1, %v55_v11, %v57_v12 }
  0x7a   :  { %81 = vmatprep.subr.mxu1 %v66_v13 }
  0x7b   :  { %82 = vmatpush1.msra.mxu1 %v65_v15 }
  0x7c   :  { %v59_v16 = vpop.permute.xlu0 %58  ;;  %v61_v17 = vpop.permute.xlu1 %60  ;;  %2473 = vmatmul.mubr.msk.f32.vlgmr.msra.gmra.mrb[0].mxu1 %vm77_vm2, %v2472_v14 }
  0x7d   :  { %v68_v18 = vsel %vm64_vm1, %v57_v12, %v59_v16  ;;  %216 = vmatprep.mubr.f32.mxu1 %v2576_v2  ;;  %v69_v23 = vsel %vm64_vm1, %v59_v16, %v61_v17 }
  0x7e   :  { %152 = vmatprep.subr.mxu1 %v68_v18 }
  0x7f   :  { %153 = vmatpush1.msra.mxu1 %v67_v19 }
  0x80   :  { %v63_v20 = vpop.permute.xlu0 %62  ;;  %v297_v21 = vpop.permute.xlu1 %296  ;;  %2474 = vmatmul.mubr.msk.f32.vlgmr.msra.gmra.mrb[2].mxu1 %vm77_vm2, %v2472_v14 }
  0x81   :  { %v70_v22 = vsel %vm64_vm1, %v61_v17, %v63_v20  ;;  %287 = vmatprep.mubr.f32.mxu1 %v2576_v2 }
  0x82   :  { %223 = vmatprep.subr.mxu1 %v70_v22  ;;  %v2495_v22 = vld [vmem:[%s2952_s1 + $0x30] sm:$0xff] }
  0x83   :  { %224 = vmatpush1.msra.mxu1 %v69_v23 }
  0x84   :  { %v299_v24 = vpop.permute.xlu0 %298  ;;  %v295_v25 = vpop.permute.xlu1 %294  ;;  %2475 = vmatmul.mubr.msk.f32.vlgmr.msra.gmra.mrb[4].mxu1 %vm77_vm2, %v2472_v14 }
  0x85   :  { %v309_v26 = vsel %vm308_vm3, %v295_v25, %v297_v21  ;;  %v310_v27 = vsel %vm308_vm3, %v297_v21, %v299_v24  ;;  %388 = vmatprep.mubr.f32.mxu1 %v2576_v2 }
  0x86   :  { %324 = vmatprep.subr.mxu1 %v310_v27 }
  0x87   :  { %325 = vmatpush1.msra.mxu1 %v309_v26 }
  0x88   :  { %v301_v29 = vpop.permute.xlu0 %300  ;;  %v303_v30 = vpop.permute.xlu1 %302  ;;  %2476 = vmatmul.mubr.msk.f32.vlgmr.msra.gmra.mrb[0].mxu1 %vm77_vm2, %v40_v28 }
  0x89   :  { %v311_v31 = vsel %vm308_vm3, %v299_v24, %v301_v29  ;;  %v312_v32 = vsel %vm308_vm3, %v301_v29, %v303_v30  ;;  %459 = vmatprep.mubr.f32.mxu1 %v2576_v2 }
  0x8a   :  { %395 = vmatprep.subr.mxu1 %v312_v32 }
  0x8b   :  { %396 = vmatpush1.msra.mxu1 %v311_v31 }
  0x8c   :  { %v542_v33 = vpop.permute.xlu0 %541  ;;  %v544_v34 = vpop.permute.xlu1 %543  ;;  %2477 = vmatmul.mubr.msk.f32.vlgmr.msra.gmra.mrb[2].mxu1 %vm77_vm2, %v40_v28 }
  0x8d   :  { %v555_v35 = vsel %vm553_vm4, %v542_v33, %v544_v34  ;;  %530 = vmatprep.mubr.f32.mxu1 %v2576_v2 }
  0x8e   :  { %569 = vmatprep.subr.mxu0 %v555_v35 }
  0x90   :  { %v305_v36 = vpop.permute.xlu0 %304  ;;  %v307_v37 = vpop.permute.xlu1 %306 }
  0x91   :  { %v313_v38 = vsel %vm308_vm3, %v303_v30, %v305_v36  ;;  %v314_v39 = vsel %vm308_vm3, %v305_v36, %v307_v37  ;;  %v2499_v36 = vld [vmem:[%s2952_s1 + $0x38] sm:$0xff] }
  0x92   :  { %466 = vmatprep.subr.mxu1 %v314_v39 }
  0x93   :  { %467 = vmatpush1.msra.mxu1 %v313_v38 }
  0x94   :  { %v540_v40 = vpop.permute.xlu0 %539  ;;  %v550_v41 = vpop.permute.xlu1 %549  ;;  %2478 = vmatmul.mubr.msk.f32.vlgmr.msra.gmra.mrb[4].mxu1 %vm77_vm2, %v40_v28 }
  0x95   :  { %v554_v43 = vsel %vm553_vm4, %v540_v40, %v542_v33  ;;  %704 = vmatprep.mubr.f32.mxu1 %v2576_v2 }
  0x96   :  { %570 = vmatpush1.msra.mxu0 %v554_v43 }
  0x97   :  { %2480 = vmatmul.mubr.msk.f32.vlgmr.msra.gmra.mrb[0].mxu0 %vm77_vm2, %v2479_v42 }
  0x98   :  { %v552_v44 = vpop.permute.xlu0 %551  ;;  %v546_v45 = vpop.permute.xlu1 %545  ;;  %775 = vmatprep.mubr.f32.mxu0 %v2576_v2 }
  0x99   :  { %v559_v46 = vsel %vm553_vm4, %v550_v41, %v552_v44  ;;  %v556_v51 = vsel %vm553_vm4, %v544_v34, %v546_v45 }
  0x9a   :  { %711 = vmatprep.subr.mxu0 %v559_v46 }
  0x9c   :  { %v548_v47 = vpop.permute.xlu0 %547  ;;  %v793_v48 = vpop.permute.xlu1 %792 }
  0x9d   :  { %v558_v49 = vsel %vm553_vm4, %v548_v47, %v550_v41  ;;  %v557_v50 = vsel %vm553_vm4, %v546_v45, %v548_v47 }
  0x9e   :  { %640 = vmatprep.subr.mxu1 %v557_v50  ;;  %712 = vmatpush1.msra.mxu0 %v558_v49  ;;  %v2503_v50 = vld [vmem:[%s2952_s1 + $0x40] sm:$0xff] }
  0x9f   :  { %641 = vmatpush1.msra.mxu1 %v556_v51  ;;  %2482 = vmatmul.mubr.msk.f32.vlgmr.msra.gmra.mrb[2].mxu0 %vm77_vm2, %v2479_v42 }
  0xa0   :  { %v795_v52 = vpop.permute.xlu0 %794  ;;  %v791_v53 = vpop.permute.xlu1 %790  ;;  %884 = vmatprep.mubr.f32.mxu0 %v2576_v2  ;;  %2481 = vmatmul.mubr.msk.f32.vlgmr.msra.gmra.mrb[2].mxu1 %vm77_vm2, %v2479_v42 }
  0xa1   :  { %v805_v54 = vsel %vm24_vm0, %v791_v53, %v793_v48  ;;  %v806_v55 = vsel %vm24_vm0, %v793_v48, %v795_v52  ;;  %955 = vmatprep.mubr.f32.mxu1 %v2576_v2 }
  0xa2   :  { %820 = vmatprep.subr.mxu0 %v806_v55 }
  0xa3   :  { %821 = vmatpush1.msra.mxu0 %v805_v54 }
  0xa4   :  { %v801_v57 = vpop.permute.xlu0 %800  ;;  %v803_v58 = vpop.permute.xlu1 %802  ;;  %2484 = vmatmul.mubr.msk.f32.vlgmr.msra.gmra.mrb[0].mxu0 %vm77_vm2, %v2483_v56 }
  0xa5   :  { %v810_v59 = vsel %vm24_vm0, %v801_v57, %v803_v58  ;;  %1026 = vmatprep.mubr.f32.mxu0 %v2576_v2 }
  0xa6   :  { %962 = vmatprep.subr.mxu0 %v810_v59  ;;  %v2275_v59 = vlaneseq }
  0xa8   :  { %v797_v60 = vpop.permute.xlu0 %796  ;;  %v799_v61 = vpop.permute.xlu1 %798 }
  0xa9   :  { %v807_v62 = vsel %vm24_vm0, %v795_v52, %v797_v60  ;;  %v809_v63 = vsel %vm24_vm0, %v799_v61, %v801_v57  ;;  %v808_v1 = vsel %vm24_vm0, %v797_v60, %v799_v61  ;;  %v2585_v60 = vmov 0  }
  0xaa   :  { %891 = vmatprep.subr.mxu1 %v808_v1  ;;  %963 = vmatpush1.msra.mxu0 %v809_v63  ;;  %v2839_v61 = vshrl.u32 %v2275_v59, 7 }
  0xab   :  { %892 = vmatpush1.msra.mxu1 %v807_v62  ;;  %2486 = vmatmul.mubr.msk.f32.vlgmr.msra.gmra.mrb[2].mxu0 %vm77_vm2, %v2483_v56 }
  0xac   :  { %v1269_v8 = vpop.permute.xlu0 %1268  ;;  %1044 = vmatprep.subr.mxu0 %v2630_v3  ;;  %v1271_v9 = vpop.permute.xlu1 %1270  ;;  %1108 = vmatprep.mubr.f32.mxu0 %v2576_v2  ;;  %v2277_v62 = vsub.s32 0, %v2839_v61  ;;  %v2281_v63 = vsub.s32 1, %v2839_v61 }
  0xad   :  { %1045 = vmatpush1.msra.mxu0 %v2619_v0  ;;  %2485 = vmatmul.mubr.msk.f32.vlgmr.msra.gmra.mrb[2].mxu1 %vm77_vm2, %v2483_v56  ;;  %v1282_v11 = vsel %vm1280_vm5, %v1269_v8, %v1271_v9 }
  0xae   :  { %1186 = vmatprep.subr.mxu0 %v2654_v7  ;;  %1115 = vmatprep.subr.mxu1 %v2642_v5 }
  0xaf   :  { %2488 = vmatmul.mubr.msk.f32.vlgmr.msra.gmra.mrb[0].mxu0 %vm77_vm2, %v2487_v10  ;;  %1116 = vmatpush1.msra.mxu1 %v2635_v4  ;;  %v2491_v4 = vld [vmem:[%s2952_s1 + $0x28] sm:$0xff] }
  0xb0   :  { %1187 = vmatpush1.msra.mxu0 %v2647_v6  ;;  %v1267_v3 = vpop.permute.xlu0 %1266  ;;  %v1277_v12 = vpop.permute.xlu1 %1276  ;;  %1250 = vmatprep.mubr.f32.mxu0 %v2576_v2 }
  0xb1   :  { %v1281_v0 = vsel %vm1280_vm5, %v1267_v3, %v1269_v8  ;;  %1296 = vmatprep.subr.mxu0 %v1282_v11  ;;  %1179 = vmatprep.mubr.f32.mxu1 %v2576_v2  ;;  %v2289_v11 = vsub.s32 3, %v2839_v61 }
  0xb2   :  { %2572 = vset.pattern.permute.xlu0 %v2585_v60  ;;  %2573 = vset.pattern.permute.xlu1 %v2585_v60 }
  0xb3   :  { %2490 = vmatmul.mubr.msk.f32.vlgmr.msra.gmra.mrb[2].mxu0 %vm77_vm2, %v2487_v10 }
  0xb4   :  { %1297 = vmatpush1.msra.mxu0 %v1281_v0  ;;  %v1279_v5 = vpop.permute.xlu0 %1278  ;;  %v1273_v7 = vpop.permute.xlu1 %1272  ;;  %1360 = vmatprep.mubr.f32.mxu0 %v2576_v2 }
  0xb5   :  { %v1286_v6 = vsel %vm1280_vm5, %v1277_v12, %v1279_v5  ;;  %2489 = vmatmul.mubr.msk.f32.vlgmr.msra.gmra.mrb[2].mxu1 %vm77_vm2, %v2487_v10  ;;  %v1283_v17 = vsel %vm1280_vm5, %v1271_v9, %v1273_v7  ;;  %v2285_v10 = vsub.s32 2, %v2839_v61 }
  0xb6   :  { %1438 = vmatprep.subr.mxu0 %v1286_v6  ;;  %1431 = vmatprep.mubr.f32.mxu1 %v2576_v2 }
  0xb7   :  { %2492 = vmatmul.mubr.msk.f32.vlgmr.msra.gmra.mrb[0].mxu0 %vm77_vm2, %v2491_v4 }
  0xb8   :  { %v1275_v13 = vpop.permute.xlu0 %1274  ;;  %v1520_v14 = vpop.permute.xlu1 %1519  ;;  %1502 = vmatprep.mubr.f32.mxu0 %v2576_v2 }
  0xb9   :  { %v1285_v15 = vsel %vm1280_vm5, %v1275_v13, %v1277_v12  ;;  %v1284_v16 = vsel %vm1280_vm5, %v1273_v7, %v1275_v13  ;;  %v2293_v12 = vsub.s32 4, %v2839_v61  ;;  %v2297_v7 = vsub.s32 5, %v2839_v61 }
  0xba   :  { %1367 = vmatprep.subr.mxu1 %v1284_v16  ;;  %1439 = vmatpush1.msra.mxu0 %v1285_v15  ;;  %v2507_v16 = vld [vmem:[%s2953_s4 + $0x1] sm:$0x3f] }
  0xbb   :  { %1368 = vmatpush1.msra.mxu1 %v1283_v17  ;;  %2494 = vmatmul.mubr.msk.f32.vlgmr.msra.gmra.mrb[2].mxu0 %vm77_vm2, %v2491_v4  ;;  %vm2273_vm10 = vcmp.gt.f32.partialorder %v2507_v16, 0.0 }
  0xbc   :  { %v1522_v18 = vpop.permute.xlu0 %1521  ;;  %v1518_v19 = vpop.permute.xlu1 %1517  ;;  %1611 = vmatprep.mubr.f32.mxu0 %v2576_v2  ;;  %v2274_v17 = vsel %vm2273_vm10, 1, %v2585_v60 }
  0xbd   :  { %v1532_v20 = vsel %vm1531_vm6, %v1518_v19, %v1520_v14  ;;  %v1533_v21 = vsel %vm1531_vm6, %v1520_v14, %v1522_v18  ;;  %2493 = vmatmul.mubr.msk.f32.vlgmr.msra.gmra.mrb[2].mxu1 %vm77_vm2, %v2491_v4  ;;  %v2282_v19 = vrot.slane %v2274_v17, %v2281_v63 }
  0xbe   :  { %1547 = vmatprep.subr.mxu0 %v1533_v21  ;;  %1682 = vmatprep.mubr.f32.mxu1 %v2576_v2  ;;  %v2290_v21 = vrot.slane %v2274_v17, %v2289_v11 }
  0xbf   :  { %1548 = vmatpush1.msra.mxu0 %v1532_v20  ;;  %v2286_v20 = vrot.slane %v2274_v17, %v2285_v10  ;;  %vm2300_vm12 = vcmp.eq.s32.totalorder %v2282_v19, 1 }
  0xc0   :  { %v1528_v23 = vpop.permute.xlu0 %1527  ;;  %v1530_v24 = vpop.permute.xlu1 %1529  ;;  %2496 = vmatmul.mubr.msk.f32.vlgmr.msra.gmra.mrb[0].mxu0 %vm77_vm2, %v2495_v22  ;;  %vm2302_vm14 = vcmp.eq.s32.totalorder %v2290_v21, 1  ;;  %v2437_v21 = vsub.s32 7, %v2839_v61 }
  0xc1   :  { %v1537_v25 = vsel %vm1531_vm6, %v1528_v23, %v1530_v24  ;;  %1753 = vmatprep.mubr.f32.mxu0 %v2576_v2  ;;  %vm2301_vm13 = vcmp.eq.s32.totalorder %v2286_v20, 1  ;;  %v2433_v20 = vsub.s32 6, %v2839_v61  ;;  %v2369_v61 = vld [vmem:[%s2956_s5 + $0x38] sm:$0xff] }
  0xc2   :  { %1689 = vmatprep.subr.mxu0 %v1537_v25 }
  0xc4   :  { %v1524_v26 = vpop.permute.xlu0 %1523  ;;  %v1526_v27 = vpop.permute.xlu1 %1525 }
  0xc5   :  { %v1534_v28 = vsel %vm1531_vm6, %v1522_v18, %v1524_v26  ;;  %v1536_v29 = vsel %vm1531_vm6, %v1526_v27, %v1528_v23  ;;  %v1535_v30 = vsel %vm1531_vm6, %v1524_v26, %v1526_v27  ;;  %v2278_v18 = vrot.slane %v2274_v17, %v2277_v62 }
  0xc6   :  { %1618 = vmatprep.subr.mxu1 %v1535_v30  ;;  %1690 = vmatpush1.msra.mxu0 %v1536_v29  ;;  %v2294_v30 = vrot.slane %v2274_v17, %v2293_v12 }
  0xc7   :  { %1619 = vmatpush1.msra.mxu1 %v1534_v28  ;;  %2498 = vmatmul.mubr.msk.f32.vlgmr.msra.gmra.mrb[2].mxu0 %vm77_vm2, %v2495_v22  ;;  %vm2299_vm11 = vcmp.eq.s32.totalorder %v2278_v18, 1 }
  0xc8   :  { %v1771_v31 = vpop.permute.xlu0 %1770  ;;  %v1773_v32 = vpop.permute.xlu1 %1772  ;;  %2497 = vmatmul.mubr.msk.f32.vlgmr.msra.gmra.mrb[2].mxu1 %vm77_vm2, %v2495_v22  ;;  %1862 = vmatprep.mubr.f32.mxu0 %v2576_v2  ;;  %vm2303_vm15 = vcmp.eq.s32.totalorder %v2294_v30, 1 }
  0xc9   :  { %v1784_v33 = vsel %vm1782_vm7, %v1771_v31, %v1773_v32  ;;  %1933 = vmatprep.mubr.f32.mxu1 %v2576_v2 }
  0xca   :  { %1798 = vmatprep.subr.mxu0 %v1784_v33 }
  0xcc   :  { %v1769_v34 = vpop.permute.xlu0 %1768  ;;  %v1779_v35 = vpop.permute.xlu1 %1778 }
  0xcd   :  { %v1783_v37 = vsel %vm1782_vm7, %v1769_v34, %v1771_v31  ;;  %v2298_v31 = vrot.slane %v2274_v17, %v2297_v7  ;;  %v2359_v17 = vld [vmem:[%s2955_s3] sm:$0xff] }
  0xce   :  { %1799 = vmatpush1.msra.mxu0 %v1783_v37 }
  0xcf   :  { %2500 = vmatmul.mubr.msk.f32.vlgmr.msra.gmra.mrb[0].mxu0 %vm77_vm2, %v2499_v36  ;;  %vm2304_vm1 = vcmp.eq.s32.totalorder %v2298_v31, 1 }
  0xd0   :  { %v1781_v38 = vpop.permute.xlu0 %1780  ;;  %v1775_v39 = vpop.permute.xlu1 %1774  ;;  %2004 = vmatprep.mubr.f32.mxu0 %v2576_v2 }
  0xd1   :  { %v1788_v40 = vsel %vm1782_vm7, %v1779_v35, %v1781_v38  ;;  %v1785_v45 = vsel %vm1782_vm7, %v1773_v32, %v1775_v39 }
  0xd2   :  { %1940 = vmatprep.subr.mxu0 %v1788_v40 }
  0xd4   :  { %v1777_v41 = vpop.permute.xlu0 %1776  ;;  %v2022_v42 = vpop.permute.xlu1 %2021 }
  0xd5   :  { %v1787_v43 = vsel %vm1782_vm7, %v1777_v41, %v1779_v35  ;;  %v1786_v44 = vsel %vm1782_vm7, %v1775_v39, %v1777_v41 }
  0xd6   :  { %1869 = vmatprep.subr.mxu1 %v1786_v44  ;;  %1941 = vmatpush1.msra.mxu0 %v1787_v43 }
  0xd7   :  { %1870 = vmatpush1.msra.mxu1 %v1785_v45  ;;  %2502 = vmatmul.mubr.msk.f32.vlgmr.msra.gmra.mrb[2].mxu0 %vm77_vm2, %v2499_v36 }
  0xd8   :  { %v2024_v46 = vpop.permute.xlu0 %2023  ;;  %2501 = vmatmul.mubr.msk.f32.vlgmr.msra.gmra.mrb[2].mxu1 %vm77_vm2, %v2499_v36  ;;  %v2020_v47 = vpop.permute.xlu1 %2019  ;;  %2113 = vmatprep.mubr.f32.mxu0 %v2576_v2 }
  0xd9   :  { %v2034_v48 = vsel %vm2033_vm8, %v2020_v47, %v2022_v42  ;;  %v2035_v49 = vsel %vm2033_vm8, %v2022_v42, %v2024_v46  ;;  %2184 = vmatprep.mubr.f32.mxu1 %v2576_v2 }
  0xda   :  { %2049 = vmatprep.subr.mxu0 %v2035_v49 }
  0xdb   :  { %2050 = vmatpush1.msra.mxu0 %v2034_v48 }
  0xdc   :  { %v2026_v51 = vpop.permute.xlu0 %2025  ;;  %2504 = vmatmul.mubr.msk.f32.vlgmr.msra.gmra.mrb[0].mxu0 %vm77_vm2, %v2503_v50  ;;  %v2028_v52 = vpop.permute.xlu1 %2027 }
  0xdd   :  { %v2036_v53 = vsel %vm2033_vm8, %v2024_v46, %v2026_v51  ;;  %v2037_v54 = vsel %vm2033_vm8, %v2026_v51, %v2028_v52  ;;  %2255 = vmatprep.mubr.f32.mxu0 %v2576_v2  ;;  %v2370_v2 = vld [vmem:[%s2953_s4] sm:$0xff] }
  0xde   :  { %2120 = vmatprep.subr.mxu1 %v2037_v54  ;;  %vm2405_vm9 = vcmp.gt.f32.partialorder %v2370_v2, 0.0 }
  0xdf   :  { %2121 = vmatpush1.msra.mxu1 %v2036_v53  ;;  %v2846_v1 = vsel %vm2405_vm9, 1, %v2585_v60 }
  0xe0   :  { %v2030_v55 = vpop.permute.xlu0 %2029  ;;  %2505 = vmatmul.mubr.msk.f32.vlgmr.msra.gmra.mrb[2].mxu1 %vm77_vm2, %v2503_v50  ;;  %v2032_v56 = vpop.permute.xlu1 %2031  ;;  %v2849_v8 = vrot.slane %v2846_v1, %v2277_v62  ;;  %v2852_v9 = vrot.slane %v2846_v1, %v2281_v63  ;;  %v2856_v3 = vrot.slane %v2846_v1, %v2285_v10  ;;  %v2861_v0 = vrot.slane %v2846_v1, %v2289_v11 }
  0xe1   :  { %v2038_v57 = vsel %vm2033_vm8, %v2028_v52, %v2030_v55  ;;  %v2039_v58 = vsel %vm2033_vm8, %v2030_v55, %v2032_v56  ;;  %v2864_v5 = vrot.slane %v2846_v1, %v2293_v12  ;;  %v2868_v4 = vrot.slane %v2846_v1, %v2297_v7  ;;  %v2311_v56 = vld [vmem:[#allocation2] sm:$0xff] }
  0xe2   :  { %2191 = vmatprep.subr.mxu0 %v2039_v58  ;;  %v2321_v58 = vld [vmem:[#allocation3] sm:$0xff]  ;;  %vm2441_vm3 = vcmp.eq.s32.totalorder %v2856_v3, 1  ;;  %vm2442_vm4 = vcmp.eq.s32.totalorder %v2861_v0, 1 }
  0xe3   :  { %2192 = vmatpush1.msra.mxu0 %v2038_v57  ;;  %vm2443_vm5 = vcmp.eq.s32.totalorder %v2864_v5, 1  ;;  %vm2444_vm6 = vcmp.eq.s32.totalorder %v2868_v4, 1 }
  0xe4   :  { %2506 = vmatmul.mubr.msk.f32.vlgmr.msra.gmra.mrb[2].mxu0 %vm77_vm2, %v2503_v50  ;;  %vm2440_vm2 = vcmp.eq.s32.totalorder %v2852_v9, 1 }
 0x15b   :  { %v390_v6 = vpop.f32.mrb[0].mxu1 }
 0x15c   :  { %v392_v13 = vpop.f32.mrb[1].mxu1 }
 0x167   :  { %v532_v14 = vpop.f32.mrb[4].mxu1 }
 0x168   :  { %v534_v15 = vpop.f32.mrb[5].mxu1 }
 0x1af   :  { %v2115_v22 = vpop.f32.mrb[0].mxu0 }
 0x1b0   :  { %v2873_v23 = vadd.f32 %v2115_v22, %v390_v6  ;;  %v2117_v24 = vpop.f32.mrb[1].mxu0  ;;  %v2434_v22 = vrot.slane %v2846_v1, %v2433_v20 }
 0x1b1   :  { %v2875_v25 = vadd.f32 %v2117_v24, %v392_v13  ;;  %v2438_v24 = vrot.slane %v2846_v1, %v2437_v21 }
 0x1b2   :  { %v2305_v26 = vsel %vm2299_vm11, %v2873_v23, 0.0  ;;  %vm2445_vm7 = vcmp.eq.s32.totalorder %v2434_v22, 1 }
 0x1b3   :  { %v2322_v27 = vmul.f32 %v2305_v26, %v2305_v26  ;;  %v2306_v28 = vsel %vm2300_vm12, %v2875_v25, 0.0  ;;  %v2879_v29 = vpop.f32.mrb[2].mxu1  ;;  %vm2446_vm8 = vcmp.eq.s32.totalorder %v2438_v24, 1 }
 0x1b4   :  { %v2312_v32 = vadd.f32 %v2306_v28, %v2305_v26  ;;  %v2323_v33 = vmul.f32 %v2306_v28, %v2306_v28  ;;  %v2307_v34 = vsel %vm2301_vm13, %v2879_v29, 0.0  ;;  %v2882_v35 = vpop.f32.mrb[3].mxu1  ;;  %v2362_v26 = vld [vmem:[%s2956_s5] sm:$0xff] }
 0x1b5   :  { %v2324_v36 = vmul.f32 %v2307_v34, %v2307_v34  ;;  %v2308_v37 = vsel %vm2302_vm14, %v2882_v35, 0.0 }
 0x1b6   :  { %v2328_v38 = vadd.f32 %v2323_v33, %v2322_v27  ;;  %v2313_v39 = vadd.f32 %v2312_v32, %v2307_v34  ;;  %v2325_v43 = vmul.f32 %v2308_v37, %v2308_v37 }
 0x1b7   :  { %v2257_v40 = vpop.f32.mrb[2].mxu0 }
 0x1b8   :  { %v2329_v41 = vadd.f32 %v2328_v38, %v2324_v36  ;;  %v2314_v42 = vadd.f32 %v2313_v39, %v2308_v37  ;;  %v2516_v44 = vadd.f32 %v2257_v40, %v532_v14  ;;  %v2259_v45 = vpop.f32.mrb[3].mxu0  ;;  %v2355_v14 = vld [vmem:[%s2954_s2] sm:$0xff] }
 0x1b9   :  { %v2517_v46 = vadd.f32 %v2259_v45, %v534_v15 }
 0x1ba   :  { %v2330_v47 = vadd.f32 %v2329_v41, %v2325_v43  ;;  %v2309_v48 = vsel %vm2303_vm15, %v2516_v44, 0.0 }
 0x1bb   :  { %v2326_v49 = vmul.f32 %v2309_v48, %v2309_v48  ;;  %v2310_v50 = vsel %vm2304_vm1, %v2517_v46, 0.0  ;;  %v2315_v51 = vadd.f32 %v2314_v42, %v2309_v48 }
 0x1bc   :  { %v2327_v52 = vmul.f32 %v2310_v50, %v2310_v50 }
 0x1bd   :  { %v2316_v53 = vadd.f32 %v2315_v51, %v2310_v50  ;;  %v2331_v54 = vadd.f32 %v2330_v47, %v2326_v49 }
 0x1bf   :  { %2317 = vadd.xlane.f32.xlu0 %v2316_v53  ;;  %v2332_v55 = vadd.f32 %v2331_v54, %v2327_v52 }
 0x1c1   :  { %2333 = vadd.xlane.f32.xlu1 %v2332_v55 }
 0x24c   :  { %v2318_v57 = vpop.xlane.xlu0 %2317 }
 0x24d   :  { %v2319_v59 = vadd.f32 %v2318_v57, %v2311_v56 }
 0x24e   :  { %v2334_v60 = vpop.xlane.xlu1 %2333 }
 0x24f   :  { %2320 = vst.msk [vmem:[#allocation2] sm:$0xff] %vm24_vm0, %v2319_v59  ;;  %v2335_v2 = vadd.f32 %v2334_v60, %v2321_v58 }
 0x251   :  { %2336 = vst.msk [vmem:[#allocation3] sm:$0xff] %vm24_vm0, %v2335_v2  ;;  %vm2439_vm0 = vcmp.eq.s32.totalorder %v2849_v8, 1 }
 0x256   :  { %v2348_v62 = vld [vmem:[#allocation2] sm:$0xff] }
 0x257   :  { %v2349_v63 = vmul.f32 0.001953125, %v2348_v62 }
 0x258   :  { %v2350_v10 = vld [vmem:[#allocation3] sm:$0xff] }
 0x259   :  { %v2351_v11 = vmul.f32 0.001953125, %v2350_v10  ;;  %v2352_v12 = vmul.f32 %v2349_v63, %v2349_v63 }
 0x25b   :  { %v2353_v7 = vsub.f32 %v2351_v11, %v2352_v12 }
 0x25d   :  { %v2354_v6 = vmax.f32 %v2353_v7, 0.0 }
 0x25f   :  { %v2356_v13 = vadd.f32 1e-05, %v2354_v6 }
 0x261   :  { %2574 = vrsqrt.f32 %v2356_v13 }
 0x26b   :  { %v2575_v15 = vpop.eup %2574 }
 0x26c   :  { %v2358_v16 = vmul.f32 %v2575_v15, %v2355_v14 }
 0x26e   :  { %2373 = vperm.xlu0 %2572, %v2358_v16   ;;  %v2360_v18 = vmul.f32 %v2358_v16, %v2349_v63 }
 0x270   :  { %v2361_v19 = vsub.f32 %v2359_v17, %v2360_v18 }
 0x272   :  { %2386 = vperm.xlu1 %2573, %v2361_v19  }
 0x2ed   :  { %v2374_v27 = vpop.permute.xlu0 %2373 }
 0x2ee   :  { %v2376_v1 = vmul.f32 %v2374_v27, %v2362_v26  ;;  %v2377_v28 = vmul.f32 %v2873_v23, %v2374_v27  ;;  %v2378_v30 = vmul.f32 %v2875_v25, %v2374_v27  ;;  %v2379_v31 = vmul.f32 %v2374_v27, %v2879_v29 }
 0x2ef   :  { %v2380_v32 = vmul.f32 %v2374_v27, %v2882_v35  ;;  %v2381_v33 = vmul.f32 %v2516_v44, %v2374_v27  ;;  %v2382_v34 = vmul.f32 %v2517_v46, %v2374_v27  ;;  %v2383_v36 = vmul.f32 %v2374_v27, %v2369_v61 }
 0x2f1   :  { %v2387_v37 = vpop.permute.xlu1 %2386 }
 0x2f2   :  { %v2389_v38 = vadd.f32 %v2387_v37, %v2376_v1  ;;  %v2390_v39 = vadd.f32 %v2387_v37, %v2377_v28  ;;  %v2391_v40 = vadd.f32 %v2387_v37, %v2378_v30  ;;  %v2392_v41 = vadd.f32 %v2387_v37, %v2379_v31 }
 0x2f3   :  { %v2393_v42 = vadd.f32 %v2387_v37, %v2380_v32  ;;  %v2394_v43 = vadd.f32 %v2387_v37, %v2381_v33  ;;  %v2395_v45 = vadd.f32 %v2387_v37, %v2382_v34  ;;  %v2396_v47 = vadd.f32 %v2387_v37, %v2383_v36 }
 0x2f4   :  { %v2397_v48 = vmax.f32 %v2389_v38, 0.0  ;;  %v2398_v23 = vmax.f32 %v2390_v39, 0.0  ;;  %v2399_v49 = vmax.f32 %v2391_v40, 0.0  ;;  %v2400_v25 = vmax.f32 %v2392_v41, 0.0 }
 0x2f5   :  { %v2401_v50 = vmax.f32 %v2393_v42, 0.0  ;;  %v2402_v29 = vmax.f32 %v2394_v43, 0.0  ;;  %v2403_v51 = vmax.f32 %v2395_v45, 0.0  ;;  %v2404_v35 = vmax.f32 %v2396_v47, 0.0 }
 0x2f6   :  { %v2447_v44 = vsel %vm2439_vm0, %v2397_v48, 0.0  ;;  %v2448_v46 = vsel %vm2440_vm2, %v2398_v23, 0.0  ;;  %v2449_v52 = vsel %vm2441_vm3, %v2399_v49, 0.0  ;;  %v2450_v53 = vsel %vm2442_vm4, %v2400_v25, 0.0 }
 0x2f7   :  { %v2451_v54 = vsel %vm2443_vm5, %v2401_v50, 0.0  ;;  %v2452_v55 = vsel %vm2444_vm6, %v2402_v29, 0.0  ;;  %v2453_v56 = vsel %vm2445_vm7, %v2403_v51, 0.0  ;;  %v2454_v8 = vsel %vm2446_vm8, %v2404_v35, 0.0  ;;  %2455 = vst [vmem:[%s2956_s5] sm:$0xff] %v2447_v44  ;;  %2456 = vst [vmem:[%s2956_s5 + $0x8] sm:$0xff] %v2448_v46 }
 0x2f8   :  { %2457 = vst [vmem:[%s2956_s5 + $0x10] sm:$0xff] %v2449_v52  ;;  %2458 = vst [vmem:[%s2956_s5 + $0x18] sm:$0xff] %v2450_v53 }
 0x2f9   :  { %2459 = vst [vmem:[%s2956_s5 + $0x20] sm:$0xff] %v2451_v54  ;;  %2460 = vst [vmem:[%s2956_s5 + $0x28] sm:$0xff] %v2452_v55 }
 0x2fa   :  { %2461 = vst [vmem:[%s2956_s5 + $0x30] sm:$0xff] %v2453_v56  ;;  %2462 = vst [vmem:[%s2956_s5 + $0x38] sm:$0xff] %v2454_v8 }

// kernel: conv_block_forward.2
= control target key start
LH: loop header
LB: loop body
LE: loop exit
PB: predicated region body
PF: predicated region fallthrough
CT: control target
= control target key end

     0   :  { %v2691_v2 = vmov 0.0   ;;  %s2692_s22 = smov 18   ;;  %s2693_s27 = smov 19   ;;  %vm24_vm0 = vcmask 7168   ;;  %vm60_vm1 = vcmask 146432   ;;  %vm71_vm2 = vcmask 1043456   ;;  %s3114_s0 = inlined_call_operand.vmem [shape: f32[4,1024], index: 0, kind: input, shape index: {}]   ;;  %s3115_s1 = inlined_call_operand.vmem [shape: f32[9,8,4], index: 1, kind: input, shape index: {}]   ;;  %s3116_s4 = inlined_call_operand.vmem [shape: f32[1,1024], index: 4, kind: input, shape index: {}]   ;;  %s3117_s2 = inlined_call_operand.vmem [shape: f32[8,1], index: 2, kind: input, shape index: {}]   ;;  %s3118_s3 = inlined_call_operand.vmem [shape: f32[8,1], index: 3, kind: input, shape index: {}]   ;;  %s3119_s5 = inlined_call_operand.vmem [shape: f32[8,1024], index: 5, kind: output, shape index: {}]  }
   0x1   :  { %v2734_v0 = vld [vmem:[%s3114_s0 + $0x8] sm:$0xff]  ;;  %v32_v1 = vld [vmem:[%s3114_s0] sm:$0xff]  ;;  %148 = vmatprep.mubr.f32.mxu1 %v2691_v2  ;;  %648 = vmatprep.mubr.f32.mxu0 %v2691_v2  ;;  %v2751_v5 = vld [vmem:[%s3114_s0 + $0x10] sm:$0xff]  ;;  %s2694_s28 = smov 17   ;;  %25 = vst.msk [vmem:[#allocation2] sm:$0xff] %vm24_vm0, %v2691_v2  ;;  %s2696_s29 = smov 127  }
   0x2   :  { %50 = vrot.lane.b32.xlu0 %v2734_v0, %s2692_s22  ;;  %46 = vrot.lane.b32.xlu1 %v32_v1, %s2692_s22  ;;  %v2742_v3 = vcombine.high %v32_v1, %v32_v1  ;;  %v2746_v4 = vcombine.high %v2734_v0, %v2734_v0  ;;  %v2757_v6 = vcombine.high %v2751_v5, %v2751_v5  ;;  %v2764_v7 = vld [vmem:[%s3114_s0 + $0x18] sm:$0xff]  ;;  %s2695_s0 = smov 1   ;;  %s2697_s30 = smov 111   ;;  %v2529_v15 = vld [vmem:[%s3115_s1 + $0x8] sm:$0xff]  ;;  %vm67_vm3 = vcmask 31744  }
   0x3   :  { %26 = vst.msk [vmem:[#allocation3] sm:$0xff] %vm24_vm0, %v2691_v2  ;;  %v1298_v8 = vcombine.high %v2764_v7, %v2764_v7  ;;  %s2698_s6 = smov 110   ;;  %s2699_s7 = smov 109   ;;  %vm311_vm4 = vcmask 154624   ;;  %v36_v28 = vld [vmem:[%s3115_s1] sm:$0xff]  ;;  %vm562_vm5 = vcmask 138240  }
   0x4   :  { %v2548_v42 = vld [vmem:[%s3115_s1 + $0x10] sm:$0xff]  ;;  %v2558_v56 = vld [vmem:[%s3115_s1 + $0x18] sm:$0xff]  ;;  %vm1313_vm6 = vcmask 1039360   ;;  %vm1570_vm7 = vcmask 908288   ;;  %vm1827_vm8 = vcmask 900096   ;;  %vm2084_vm9 = vcmask 891904  }
   0x6   :  { %52 = vrot.lane.b32.xlu1 %v2746_v4, %s2692_s22  ;;  %48 = vrot.lane.b32.xlu0 %v2742_v3, %s2692_s22 }
   0xa   :  { %56 = vrot.lane.b32.xlu1 %v2757_v6, %s2692_s22  ;;  %54 = vrot.lane.b32.xlu0 %v2751_v5, %s2692_s22 }
   0xe   :  { %299 = vrot.lane.b32.xlu1 %v2742_v3, %s2693_s27  ;;  %58 = vrot.lane.b32.xlu0 %v2764_v7, %s2692_s22 }
  0x12   :  { %297 = vrot.lane.b32.xlu1 %v32_v1, %s2693_s27  ;;  %301 = vrot.lane.b32.xlu0 %v2734_v0, %s2693_s27 }
  0x16   :  { %305 = vrot.lane.b32.xlu1 %v2751_v5, %s2693_s27  ;;  %303 = vrot.lane.b32.xlu0 %v2746_v4, %s2693_s27 }
  0x1a   :  { %552 = vrot.lane.b32.xlu1 %v2734_v0, %s2694_s28  ;;  %550 = vrot.lane.b32.xlu0 %v2742_v3, %s2694_s28 }
  0x1e   :  { %309 = vrot.lane.b32.xlu1 %v2764_v7, %s2693_s27  ;;  %307 = vrot.lane.b32.xlu0 %v2757_v6, %s2693_s27 }
  0x22   :  { %558 = vrot.lane.b32.xlu1 %v2757_v6, %s2694_s28  ;;  %548 = vrot.lane.b32.xlu0 %v32_v1, %s2694_s28 }
  0x26   :  { %554 = vrot.lane.b32.xlu1 %v2746_v4, %s2694_s28  ;;  %560 = vrot.lane.b32.xlu0 %v2764_v7, %s2694_s28 }
  0x2a   :  { %807 = vrot.lane.b32.xlu1 %v2742_v3, %s2695_s0  ;;  %556 = vrot.lane.b32.xlu0 %v2751_v5, %s2694_s28 }
  0x2e   :  { %805 = vrot.lane.b32.xlu1 %v32_v1, %s2695_s0  ;;  %809 = vrot.lane.b32.xlu0 %v2734_v0, %s2695_s0 }
  0x32   :  { %817 = vrot.lane.b32.xlu1 %v2764_v7, %s2695_s0  ;;  %815 = vrot.lane.b32.xlu0 %v2757_v6, %s2695_s0 }
  0x36   :  { %813 = vrot.lane.b32.xlu1 %v2751_v5, %s2695_s0  ;;  %811 = vrot.lane.b32.xlu0 %v2746_v4, %s2695_s0 }
  0x3a   :  { %1303 = vrot.lane.b32.xlu1 %v2746_v4, %s2696_s29  ;;  %1301 = vrot.lane.b32.xlu0 %v2734_v0, %s2696_s29 }
  0x3e   :  { %1309 = vrot.lane.b32.xlu1 %v2764_v7, %s2696_s29  ;;  %1299 = vrot.lane.b32.xlu0 %v2742_v3, %s2696_s29 }
  0x42   :  { %1305 = vrot.lane.b32.xlu1 %v2751_v5, %s2696_s29  ;;  %1311 = vrot.lane.b32.xlu0 %v1298_v8, %s2696_s29 }
  0x46   :  { %1558 = vrot.lane.b32.xlu1 %v2734_v0, %s2697_s30  ;;  %1307 = vrot.lane.b32.xlu0 %v2757_v6, %s2696_s29 }
  0x4a   :  { %1556 = vrot.lane.b32.xlu1 %v2742_v3, %s2697_s30  ;;  %1560 = vrot.lane.b32.xlu0 %v2746_v4, %s2697_s30 }
  0x4e   :  { %1568 = vrot.lane.b32.xlu1 %v1298_v8, %s2697_s30  ;;  %1566 = vrot.lane.b32.xlu0 %v2764_v7, %s2697_s30 }
  0x52   :  { %1564 = vrot.lane.b32.xlu1 %v2757_v6, %s2697_s30  ;;  %1562 = vrot.lane.b32.xlu0 %v2751_v5, %s2697_s30 }
  0x56   :  { %1817 = vrot.lane.b32.xlu1 %v2746_v4, %s2698_s6  ;;  %1815 = vrot.lane.b32.xlu0 %v2734_v0, %s2698_s6 }
  0x5a   :  { %1823 = vrot.lane.b32.xlu1 %v2764_v7, %s2698_s6  ;;  %1813 = vrot.lane.b32.xlu0 %v2742_v3, %s2698_s6 }
  0x5e   :  { %1819 = vrot.lane.b32.xlu1 %v2751_v5, %s2698_s6  ;;  %1825 = vrot.lane.b32.xlu0 %v1298_v8, %s2698_s6 }
  0x62   :  { %2072 = vrot.lane.b32.xlu1 %v2734_v0, %s2699_s7  ;;  %1821 = vrot.lane.b32.xlu0 %v2757_v6, %s2698_s6 }
  0x66   :  { %2070 = vrot.lane.b32.xlu1 %v2742_v3, %s2699_s7  ;;  %2074 = vrot.lane.b32.xlu0 %v2746_v4, %s2699_s7 }
  0x6a   :  { %2078 = vrot.lane.b32.xlu1 %v2757_v6, %s2699_s7  ;;  %2076 = vrot.lane.b32.xlu0 %v2751_v5, %s2699_s7 }
  0x6e   :  { %2082 = vrot.lane.b32.xlu1 %v1298_v8, %s2699_s7  ;;  %2080 = vrot.lane.b32.xlu0 %v2764_v7, %s2699_s7 }
  0x74   :  { %v51_v9 = vpop.permute.xlu0 %50  ;;  %v47_v10 = vpop.permute.xlu1 %46 }
  0x78   :  { %v53_v11 = vpop.permute.xlu1 %52  ;;  %v49_v12 = vpop.permute.xlu0 %48 }
  0x79   :  { %v62_v13 = vsel %vm60_vm1, %v49_v12, %v51_v9  ;;  %v61_v14 = vsel %vm60_vm1, %v47_v10, %v49_v12  ;;  %v63_v19 = vsel %vm60_vm1, %v51_v9, %v53_v11  ;;  %v2568_v10 = vld [vmem:[%s3115_s1 + $0x20] sm:$0xff] }
  0x7a   :  { %2530 = vmatprep.subr.msk.mxu1 %vm71_vm2, %v62_v13 }
  0x7b   :  { %2531 = vmatpush1.msk.msra.mxu1 %vm71_vm2, %v61_v14 }
  0x7c   :  { %v57_v16 = vpop.permute.xlu1 %56  ;;  %v55_v17 = vpop.permute.xlu0 %54  ;;  %2532 = vmatmul.mubr.msk.f32.vlgmr.msra.gmra.mrb[0].mxu1 %vm67_vm3, %v2529_v15 }
  0x7d   :  { %v64_v18 = vsel %vm60_vm1, %v53_v11, %v55_v17  ;;  %219 = vmatprep.mubr.f32.mxu1 %v2691_v2  ;;  %v65_v23 = vsel %vm60_vm1, %v55_v17, %v57_v16 }
  0x7e   :  { %2533 = vmatprep.subr.msk.mxu1 %vm71_vm2, %v64_v18 }
  0x7f   :  { %2534 = vmatpush1.msk.msra.mxu1 %vm71_vm2, %v63_v19 }
  0x80   :  { %v300_v20 = vpop.permute.xlu1 %299  ;;  %v59_v21 = vpop.permute.xlu0 %58  ;;  %2535 = vmatmul.mubr.msk.f32.vlgmr.msra.gmra.mrb[2].mxu1 %vm67_vm3, %v2529_v15 }
  0x81   :  { %v66_v22 = vsel %vm60_vm1, %v57_v16, %v59_v21  ;;  %290 = vmatprep.mubr.f32.mxu1 %v2691_v2 }
  0x82   :  { %2536 = vmatprep.subr.msk.mxu1 %vm71_vm2, %v66_v22  ;;  %v2588_v22 = vld [vmem:[%s3115_s1 + $0x30] sm:$0xff] }
  0x83   :  { %2537 = vmatpush1.msk.msra.mxu1 %vm71_vm2, %v65_v23 }
  0x84   :  { %v298_v24 = vpop.permute.xlu1 %297  ;;  %v302_v25 = vpop.permute.xlu0 %301  ;;  %2538 = vmatmul.mubr.msk.f32.vlgmr.msra.gmra.mrb[4].mxu1 %vm67_vm3, %v2529_v15 }
  0x85   :  { %v312_v26 = vsel %vm311_vm4, %v298_v24, %v300_v20  ;;  %v313_v27 = vsel %vm311_vm4, %v300_v20, %v302_v25  ;;  %397 = vmatprep.mubr.f32.mxu1 %v2691_v2 }
  0x86   :  { %2539 = vmatprep.subr.msk.mxu1 %vm71_vm2, %v313_v27 }
  0x87   :  { %2540 = vmatpush1.msk.msra.mxu1 %vm71_vm2, %v312_v26 }
  0x88   :  { %v306_v29 = vpop.permute.xlu1 %305  ;;  %v304_v30 = vpop.permute.xlu0 %303  ;;  %2541 = vmatmul.mubr.msk.f32.vlgmr.msra.gmra.mrb[0].mxu1 %vm67_vm3, %v36_v28 }
  0x89   :  { %v314_v31 = vsel %vm311_vm4, %v302_v25, %v304_v30  ;;  %v315_v32 = vsel %vm311_vm4, %v304_v30, %v306_v29  ;;  %468 = vmatprep.mubr.f32.mxu1 %v2691_v2 }
  0x8a   :  { %2542 = vmatprep.subr.msk.mxu1 %vm71_vm2, %v315_v32 }
  0x8b   :  { %2543 = vmatpush1.msk.msra.mxu1 %vm71_vm2, %v314_v31 }
  0x8c   :  { %v553_v33 = vpop.permute.xlu1 %552  ;;  %v551_v34 = vpop.permute.xlu0 %550  ;;  %2544 = vmatmul.mubr.msk.f32.vlgmr.msra.gmra.mrb[2].mxu1 %vm67_vm3, %v36_v28 }
  0x8d   :  { %v564_v35 = vsel %vm562_vm5, %v551_v34, %v553_v33  ;;  %539 = vmatprep.mubr.f32.mxu1 %v2691_v2 }
  0x8e   :  { %2549 = vmatprep.subr.msk.mxu0 %vm71_vm2, %v564_v35 }
  0x90   :  { %v310_v36 = vpop.permute.xlu1 %309  ;;  %v308_v37 = vpop.permute.xlu0 %307 }
  0x91   :  { %v316_v38 = vsel %vm311_vm4, %v306_v29, %v308_v37  ;;  %v317_v39 = vsel %vm311_vm4, %v308_v37, %v310_v36  ;;  %v2598_v36 = vld [vmem:[%s3115_s1 + $0x38] sm:$0xff] }
  0x92   :  { %2545 = vmatprep.subr.msk.mxu1 %vm71_vm2, %v317_v39 }
  0x93   :  { %2546 = vmatpush1.msk.msra.mxu1 %vm71_vm2, %v316_v38 }
  0x94   :  { %v559_v40 = vpop.permute.xlu1 %558  ;;  %v549_v41 = vpop.permute.xlu0 %548  ;;  %2547 = vmatmul.mubr.msk.f32.vlgmr.msra.gmra.mrb[4].mxu1 %vm67_vm3, %v36_v28 }
  0x95   :  { %v563_v43 = vsel %vm562_vm5, %v549_v41, %v551_v34  ;;  %719 = vmatprep.mubr.f32.mxu1 %v2691_v2 }
  0x96   :  { %2550 = vmatpush1.msk.msra.mxu0 %vm71_vm2, %v563_v43 }
  0x97   :  { %2551 = vmatmul.mubr.msk.f32.vlgmr.msra.gmra.mrb[0].mxu0 %vm67_vm3, %v2548_v42 }
  0x98   :  { %v555_v44 = vpop.permute.xlu1 %554  ;;  %v561_v45 = vpop.permute.xlu0 %560  ;;  %790 = vmatprep.mubr.f32.mxu0 %v2691_v2 }
  0x99   :  { %v568_v46 = vsel %vm562_vm5, %v559_v40, %v561_v45  ;;  %v565_v51 = vsel %vm562_vm5, %v553_v33, %v555_v44 }
  0x9a   :  { %2555 = vmatprep.subr.msk.mxu0 %vm71_vm2, %v568_v46 }
  0x9c   :  { %v808_v47 = vpop.permute.xlu1 %807  ;;  %v557_v48 = vpop.permute.xlu0 %556 }
  0x9d   :  { %v566_v49 = vsel %vm562_vm5, %v555_v44, %v557_v48  ;;  %v567_v50 = vsel %vm562_vm5, %v557_v48, %v559_v40 }
  0x9e   :  { %2552 = vmatprep.subr.msk.mxu1 %vm71_vm2, %v566_v49  ;;  %2556 = vmatpush1.msk.msra.mxu0 %vm71_vm2, %v567_v50  ;;  %v2608_v50 = vld [vmem:[%s3115_s1 + $0x40] sm:$0xff] }
  0x9f   :  { %2553 = vmatpush1.msk.msra.mxu1 %vm71_vm2, %v565_v51  ;;  %2557 = vmatmul.mubr.msk.f32.vlgmr.msra.gmra.mrb[2].mxu0 %vm67_vm3, %v2548_v42 }
  0xa0   :  { %v806_v52 = vpop.permute.xlu1 %805  ;;  %v810_v53 = vpop.permute.xlu0 %809  ;;  %905 = vmatprep.mubr.f32.mxu0 %v2691_v2  ;;  %2554 = vmatmul.mubr.msk.f32.vlgmr.msra.gmra.mrb[2].mxu1 %vm67_vm3, %v2548_v42 }
  0xa1   :  { %v820_v54 = vsel %vm24_vm0, %v806_v52, %v808_v47  ;;  %v821_v55 = vsel %vm24_vm0, %v808_v47, %v810_v53  ;;  %976 = vmatprep.mubr.f32.mxu1 %v2691_v2 }
  0xa2   :  { %2559 = vmatprep.subr.msk.mxu0 %vm71_vm2, %v821_v55 }
  0xa3   :  { %2560 = vmatpush1.msk.msra.mxu0 %vm71_vm2, %v820_v54 }
  0xa4   :  { %v818_v57 = vpop.permute.xlu1 %817  ;;  %v816_v58 = vpop.permute.xlu0 %815  ;;  %2561 = vmatmul.mubr.msk.f32.vlgmr.msra.gmra.mrb[0].mxu0 %vm67_vm3, %v2558_v56 }
  0xa5   :  { %v825_v59 = vsel %vm24_vm0, %v816_v58, %v818_v57  ;;  %1047 = vmatprep.mubr.f32.mxu0 %v2691_v2 }
  0xa6   :  { %2565 = vmatprep.subr.msk.mxu0 %vm71_vm2, %v825_v59  ;;  %v2332_v59 = vlaneseq }
  0xa8   :  { %v814_v60 = vpop.permute.xlu1 %813  ;;  %v812_v61 = vpop.permute.xlu0 %811 }
  0xa9   :  { %v824_v62 = vsel %vm24_vm0, %v814_v60, %v816_v58  ;;  %v822_v63 = vsel %vm24_vm0, %v810_v53, %v812_v61  ;;  %v823_v1 = vsel %vm24_vm0, %v812_v61, %v814_v60  ;;  %v3002_v60 = vshrl.u32 %v2332_v59, 7  ;;  %v2427_v61 = vld [vmem:[%s3116_s4] sm:$0xff] }
  0xaa   :  { %2562 = vmatprep.subr.msk.mxu1 %vm71_vm2, %v823_v1  ;;  %2566 = vmatpush1.msk.msra.mxu0 %vm71_vm2, %v824_v62  ;;  %vm2462_vm10 = vcmp.gt.f32.partialorder %v2427_v61, 0.0 }
  0xab   :  { %2563 = vmatpush1.msk.msra.mxu1 %vm71_vm2, %v822_v63  ;;  %2567 = vmatmul.mubr.msk.f32.vlgmr.msra.gmra.mrb[2].mxu0 %vm67_vm3, %v2558_v56  ;;  %v2334_v62 = vsub.s32 0, %v3002_v60  ;;  %v2338_v63 = vsub.s32 1, %v3002_v60 }
  0xac   :  { %v1304_v8 = vpop.permute.xlu1 %1303  ;;  %2569 = vmatprep.subr.msk.mxu0 %vm71_vm2, %v2734_v0  ;;  %v1302_v9 = vpop.permute.xlu0 %1301  ;;  %1141 = vmatprep.mubr.f32.mxu0 %v2691_v2 }
  0xad   :  { %2570 = vmatpush1.msk.msra.mxu0 %vm71_vm2, %v2742_v3  ;;  %2564 = vmatmul.mubr.msk.f32.vlgmr.msra.gmra.mrb[2].mxu1 %vm67_vm3, %v2558_v56  ;;  %v1315_v0 = vsel %vm1313_vm6, %v1302_v9, %v1304_v8 }
  0xae   :  { %2575 = vmatprep.subr.msk.mxu0 %vm71_vm2, %v2764_v7  ;;  %2572 = vmatprep.subr.msk.mxu1 %vm71_vm2, %v2751_v5 }
  0xaf   :  { %2571 = vmatmul.mubr.msk.f32.vlgmr.msra.gmra.mrb[0].mxu0 %vm67_vm3, %v2568_v10  ;;  %2573 = vmatpush1.msk.msra.mxu1 %vm71_vm2, %v2746_v4 }
  0xb0   :  { %2576 = vmatpush1.msk.msra.mxu0 %vm71_vm2, %v2757_v6  ;;  %v1310_v11 = vpop.permute.xlu1 %1309  ;;  %v1300_v3 = vpop.permute.xlu0 %1299  ;;  %1283 = vmatprep.mubr.f32.mxu0 %v2691_v2  ;;  %v2578_v6 = vld [vmem:[%s3115_s1 + $0x28] sm:$0xff] }
  0xb1   :  { %2579 = vmatprep.subr.msk.mxu0 %vm71_vm2, %v1315_v0  ;;  %v1314_v7 = vsel %vm1313_vm6, %v1300_v3, %v1302_v9  ;;  %1212 = vmatprep.mubr.f32.mxu1 %v2691_v2  ;;  %v2350_v3 = vsub.s32 4, %v3002_v60 }
  0xb3   :  { %2577 = vmatmul.mubr.msk.f32.vlgmr.msra.gmra.mrb[2].mxu0 %vm67_vm3, %v2568_v10 }
  0xb4   :  { %2580 = vmatpush1.msk.msra.mxu0 %vm71_vm2, %v1314_v7  ;;  %v1306_v4 = vpop.permute.xlu1 %1305  ;;  %v1312_v5 = vpop.permute.xlu0 %1311  ;;  %1399 = vmatprep.mubr.f32.mxu0 %v2691_v2 }
  0xb5   :  { %v1319_v12 = vsel %vm1313_vm6, %v1310_v11, %v1312_v5  ;;  %2574 = vmatmul.mubr.msk.f32.vlgmr.msra.gmra.mrb[2].mxu1 %vm67_vm3, %v2568_v10  ;;  %v1316_v17 = vsel %vm1313_vm6, %v1304_v8, %v1306_v4  ;;  %v2342_v10 = vsub.s32 2, %v3002_v60  ;;  %v2354_v5 = vsub.s32 5, %v3002_v60 }
  0xb6   :  { %2585 = vmatprep.subr.msk.mxu0 %vm71_vm2, %v1319_v12  ;;  %1470 = vmatprep.mubr.f32.mxu1 %v2691_v2 }
  0xb7   :  { %2581 = vmatmul.mubr.msk.f32.vlgmr.msra.gmra.mrb[0].mxu0 %vm67_vm3, %v2578_v6 }
  0xb8   :  { %v1559_v13 = vpop.permute.xlu1 %1558  ;;  %v1308_v14 = vpop.permute.xlu0 %1307  ;;  %1541 = vmatprep.mubr.f32.mxu0 %v2691_v2 }
  0xb9   :  { %v1317_v15 = vsel %vm1313_vm6, %v1306_v4, %v1308_v14  ;;  %v1318_v16 = vsel %vm1313_vm6, %v1308_v14, %v1310_v11  ;;  %v2346_v11 = vsub.s32 3, %v3002_v60 }
  0xba   :  { %2582 = vmatprep.subr.msk.mxu1 %vm71_vm2, %v1317_v15  ;;  %2586 = vmatpush1.msk.msra.mxu0 %vm71_vm2, %v1318_v16  ;;  %v2618_v16 = vld [vmem:[%s3116_s4 + $0x1] sm:$0x3f] }
  0xbb   :  { %2583 = vmatpush1.msk.msra.mxu1 %vm71_vm2, %v1316_v17  ;;  %2587 = vmatmul.mubr.msk.f32.vlgmr.msra.gmra.mrb[2].mxu0 %vm67_vm3, %v2578_v6  ;;  %vm2330_vm11 = vcmp.gt.f32.partialorder %v2618_v16, 0.0 }
  0xbc   :  { %v1557_v18 = vpop.permute.xlu1 %1556  ;;  %v1561_v19 = vpop.permute.xlu0 %1560  ;;  %1656 = vmatprep.mubr.f32.mxu0 %v2691_v2 }
  0xbd   :  { %v1571_v20 = vsel %vm1570_vm7, %v1557_v18, %v1559_v13  ;;  %v1572_v21 = vsel %vm1570_vm7, %v1559_v13, %v1561_v19  ;;  %2584 = vmatmul.mubr.msk.f32.vlgmr.msra.gmra.mrb[2].mxu1 %vm67_vm3, %v2578_v6 }
  0xbe   :  { %2589 = vmatprep.subr.msk.mxu0 %vm71_vm2, %v1572_v21  ;;  %1727 = vmatprep.mubr.f32.mxu1 %v2691_v2 }
  0xbf   :  { %2590 = vmatpush1.msk.msra.mxu0 %vm71_vm2, %v1571_v20 }
  0xc0   :  { %v1569_v23 = vpop.permute.xlu1 %1568  ;;  %v1567_v24 = vpop.permute.xlu0 %1566  ;;  %2591 = vmatmul.mubr.msk.f32.vlgmr.msra.gmra.mrb[0].mxu0 %vm67_vm3, %v2588_v22 }
  0xc1   :  { %v1576_v25 = vsel %vm1570_vm7, %v1567_v24, %v1569_v23  ;;  %1798 = vmatprep.mubr.f32.mxu0 %v2691_v2 }
  0xc2   :  { %2595 = vmatprep.subr.msk.mxu0 %vm71_vm2, %v1576_v25 }
  0xc4   :  { %v1565_v26 = vpop.permute.xlu1 %1564  ;;  %v1563_v27 = vpop.permute.xlu0 %1562 }
  0xc5   :  { %v1575_v28 = vsel %vm1570_vm7, %v1565_v26, %v1567_v24  ;;  %v1573_v29 = vsel %vm1570_vm7, %v1561_v19, %v1563_v27  ;;  %v1574_v30 = vsel %vm1570_vm7, %v1563_v27, %v1565_v26 }
  0xc6   :  { %2592 = vmatprep.subr.msk.mxu1 %vm71_vm2, %v1574_v30  ;;  %2596 = vmatpush1.msk.msra.mxu0 %vm71_vm2, %v1575_v28 }
  0xc7   :  { %2593 = vmatpush1.msk.msra.mxu1 %vm71_vm2, %v1573_v29  ;;  %2597 = vmatmul.mubr.msk.f32.vlgmr.msra.gmra.mrb[2].mxu0 %vm67_vm3, %v2588_v22 }
  0xc8   :  { %v1818_v31 = vpop.permute.xlu1 %1817  ;;  %v1816_v32 = vpop.permute.xlu0 %1815  ;;  %2594 = vmatmul.mubr.msk.f32.vlgmr.msra.gmra.mrb[2].mxu1 %vm67_vm3, %v2588_v22  ;;  %1913 = vmatprep.mubr.f32.mxu0 %v2691_v2 }
  0xc9   :  { %v1829_v33 = vsel %vm1827_vm8, %v1816_v32, %v1818_v31  ;;  %1984 = vmatprep.mubr.f32.mxu1 %v2691_v2 }
  0xca   :  { %2599 = vmatprep.subr.msk.mxu0 %vm71_vm2, %v1829_v33 }
  0xcc   :  { %v1824_v34 = vpop.permute.xlu1 %1823  ;;  %v1814_v35 = vpop.permute.xlu0 %1813 }
  0xcd   :  { %v1828_v37 = vsel %vm1827_vm8, %v1814_v35, %v1816_v32 }
  0xce   :  { %2600 = vmatpush1.msk.msra.mxu0 %vm71_vm2, %v1828_v37 }
  0xcf   :  { %2601 = vmatmul.mubr.msk.f32.vlgmr.msra.gmra.mrb[0].mxu0 %vm67_vm3, %v2598_v36 }
  0xd0   :  { %v1820_v38 = vpop.permute.xlu1 %1819  ;;  %v1826_v39 = vpop.permute.xlu0 %1825  ;;  %2055 = vmatprep.mubr.f32.mxu0 %v2691_v2 }
  0xd1   :  { %v1833_v40 = vsel %vm1827_vm8, %v1824_v34, %v1826_v39  ;;  %v1830_v45 = vsel %vm1827_vm8, %v1818_v31, %v1820_v38 }
  0xd2   :  { %2605 = vmatprep.subr.msk.mxu0 %vm71_vm2, %v1833_v40 }
  0xd4   :  { %v2073_v41 = vpop.permute.xlu1 %2072  ;;  %v1822_v42 = vpop.permute.xlu0 %1821 }
  0xd5   :  { %v1831_v43 = vsel %vm1827_vm8, %v1820_v38, %v1822_v42  ;;  %v1832_v44 = vsel %vm1827_vm8, %v1822_v42, %v1824_v34 }
  0xd6   :  { %2602 = vmatprep.subr.msk.mxu1 %vm71_vm2, %v1831_v43  ;;  %2606 = vmatpush1.msk.msra.mxu0 %vm71_vm2, %v1832_v44 }
  0xd7   :  { %2603 = vmatpush1.msk.msra.mxu1 %vm71_vm2, %v1830_v45  ;;  %2607 = vmatmul.mubr.msk.f32.vlgmr.msra.gmra.mrb[2].mxu0 %vm67_vm3, %v2598_v36 }
  0xd8   :  { %v2071_v46 = vpop.permute.xlu1 %2070  ;;  %2604 = vmatmul.mubr.msk.f32.vlgmr.msra.gmra.mrb[2].mxu1 %vm67_vm3, %v2598_v36  ;;  %v2075_v47 = vpop.permute.xlu0 %2074  ;;  %2170 = vmatprep.mubr.f32.mxu0 %v2691_v2 }
  0xd9   :  { %v2085_v48 = vsel %vm2084_vm9, %v2071_v46, %v2073_v41  ;;  %v2086_v49 = vsel %vm2084_vm9, %v2073_v41, %v2075_v47  ;;  %2241 = vmatprep.mubr.f32.mxu1 %v2691_v2 }
  0xda   :  { %2609 = vmatprep.subr.msk.mxu0 %vm71_vm2, %v2086_v49 }
  0xdb   :  { %2610 = vmatpush1.msk.msra.mxu0 %vm71_vm2, %v2085_v48 }
  0xdc   :  { %v2079_v51 = vpop.permute.xlu1 %2078  ;;  %2611 = vmatmul.mubr.msk.f32.vlgmr.msra.gmra.mrb[0].mxu0 %vm67_vm3, %v2608_v50  ;;  %v2077_v52 = vpop.permute.xlu0 %2076 }
  0xdd   :  { %v2087_v53 = vsel %vm2084_vm9, %v2075_v47, %v2077_v52  ;;  %v2088_v54 = vsel %vm2084_vm9, %v2077_v52, %v2079_v51  ;;  %2312 = vmatprep.mubr.f32.mxu0 %v2691_v2  ;;  %v2700_v2 = vmov 0  }
  0xde   :  { %2612 = vmatprep.subr.msk.mxu1 %vm71_vm2, %v2088_v54  ;;  %2683 = vset.pattern.permute.xlu0 %v2700_v2  ;;  %v3009_v1 = vsel %vm2462_vm10, 1, %v2700_v2  ;;  %v2331_v17 = vsel %vm2330_vm11, 1, %v2700_v2 }
  0xdf   :  { %2613 = vmatpush1.msk.msra.mxu1 %vm71_vm2, %v2087_v53  ;;  %2684 = vset.pattern.permute.xlu1 %v2700_v2  ;;  %v3012_v8 = vrot.slane %v3009_v1, %v2334_v62  ;;  %v3015_v9 = vrot.slane %v3009_v1, %v2338_v63  ;;  %v3019_v0 = vrot.slane %v3009_v1, %v2342_v10 }
  0xe0   :  { %v2083_v55 = vpop.permute.xlu1 %2082  ;;  %2614 = vmatmul.mubr.msk.f32.vlgmr.msra.gmra.mrb[2].mxu1 %vm67_vm3, %v2608_v50  ;;  %v2081_v56 = vpop.permute.xlu0 %2080  ;;  %v3024_v7 = vrot.slane %v3009_v1, %v2346_v11  ;;  %v3027_v4 = vrot.slane %v3009_v1, %v2350_v3  ;;  %v3031_v6 = vrot.slane %v3009_v1, %v2354_v5  ;;  %v2335_v18 = vrot.slane %v2331_v17, %v2334_v62 }
  0xe1   :  { %v2089_v57 = vsel %vm2084_vm9, %v2079_v51, %v2081_v56  ;;  %v2090_v58 = vsel %vm2084_vm9, %v2081_v56, %v2083_v55  ;;  %v2339_v19 = vrot.slane %v2331_v17, %v2338_v63  ;;  %v2343_v20 = vrot.slane %v2331_v17, %v2342_v10  ;;  %v2368_v56 = vld [vmem:[#allocation2] sm:$0xff] }
  0xe2   :  { %2615 = vmatprep.subr.msk.mxu0 %vm71_vm2, %v2090_v58  ;;  %v2347_v21 = vrot.slane %v2331_v17, %v2346_v11  ;;  %vm2356_vm12 = vcmp.eq.s32.totalorder %v2335_v18, 1  ;;  %v2351_v30 = vrot.slane %v2331_v17, %v2350_v3  ;;  %v2355_v31 = vrot.slane %v2331_v17, %v2354_v5  ;;  %v2378_v58 = vld [vmem:[#allocation3] sm:$0xff]  ;;  %v2416_v17 = vld [vmem:[%s3118_s3] sm:$0xff] }
  0xe3   :  { %2616 = vmatpush1.msk.msra.mxu0 %vm71_vm2, %v2089_v57  ;;  %vm2357_vm13 = vcmp.eq.s32.totalorder %v2339_v19, 1  ;;  %vm2358_vm14 = vcmp.eq.s32.totalorder %v2343_v20, 1  ;;  %v2490_v20 = vsub.s32 6, %v3002_v60  ;;  %vm2498_vm4 = vcmp.eq.s32.totalorder %v3019_v0, 1 }
  0xe4   :  { %2617 = vmatmul.mubr.msk.f32.vlgmr.msra.gmra.mrb[2].mxu0 %vm67_vm3, %v2608_v50  ;;  %vm2359_vm15 = vcmp.eq.s32.totalorder %v2347_v21, 1  ;;  %vm2360_vm1 = vcmp.eq.s32.totalorder %v2351_v30, 1  ;;  %vm2361_vm2 = vcmp.eq.s32.totalorder %v2355_v31, 1  ;;  %v2494_v21 = vsub.s32 7, %v3002_v60  ;;  %v2426_v60 = vld [vmem:[%s3119_s5 + $0x38] sm:$0xff] }
  0xe5   :  { %vm2497_vm3 = vcmp.eq.s32.totalorder %v3015_v9, 1  ;;  %vm2499_vm5 = vcmp.eq.s32.totalorder %v3024_v7, 1  ;;  %vm2500_vm6 = vcmp.eq.s32.totalorder %v3027_v4, 1  ;;  %vm2501_vm7 = vcmp.eq.s32.totalorder %v3031_v6, 1 }
 0x15b   :  { %v399_v12 = vpop.f32.mrb[0].mxu1 }
 0x15c   :  { %v401_v13 = vpop.f32.mrb[1].mxu1 }
 0x167   :  { %v541_v14 = vpop.f32.mrb[4].mxu1 }
 0x168   :  { %v543_v15 = vpop.f32.mrb[5].mxu1 }
 0x1af   :  { %v2172_v22 = vpop.f32.mrb[0].mxu0 }
 0x1b0   :  { %v3036_v23 = vadd.f32 %v2172_v22, %v399_v12  ;;  %v2174_v24 = vpop.f32.mrb[1].mxu0  ;;  %v2491_v22 = vrot.slane %v3009_v1, %v2490_v20 }
 0x1b1   :  { %v3038_v25 = vadd.f32 %v2174_v24, %v401_v13  ;;  %v2495_v24 = vrot.slane %v3009_v1, %v2494_v21 }
 0x1b2   :  { %v2362_v26 = vsel %vm2356_vm12, %v3036_v23, 0.0  ;;  %vm2502_vm8 = vcmp.eq.s32.totalorder %v2491_v22, 1 }
 0x1b3   :  { %v2379_v27 = vmul.f32 %v2362_v26, %v2362_v26  ;;  %v2363_v28 = vsel %vm2357_vm13, %v3038_v25, 0.0  ;;  %v3042_v29 = vpop.f32.mrb[2].mxu1  ;;  %vm2503_vm9 = vcmp.eq.s32.totalorder %v2495_v24, 1 }
 0x1b4   :  { %v2369_v32 = vadd.f32 %v2363_v28, %v2362_v26  ;;  %v2380_v33 = vmul.f32 %v2363_v28, %v2363_v28  ;;  %v2364_v34 = vsel %vm2358_vm14, %v3042_v29, 0.0  ;;  %v3045_v35 = vpop.f32.mrb[3].mxu1  ;;  %v2419_v26 = vld [vmem:[%s3119_s5] sm:$0xff] }
 0x1b5   :  { %v2381_v36 = vmul.f32 %v2364_v34, %v2364_v34  ;;  %v2365_v37 = vsel %vm2359_vm15, %v3045_v35, 0.0 }
 0x1b6   :  { %v2385_v38 = vadd.f32 %v2380_v33, %v2379_v27  ;;  %v2370_v39 = vadd.f32 %v2369_v32, %v2364_v34  ;;  %v2382_v43 = vmul.f32 %v2365_v37, %v2365_v37 }
 0x1b7   :  { %v2314_v40 = vpop.f32.mrb[2].mxu0 }
 0x1b8   :  { %v2386_v41 = vadd.f32 %v2385_v38, %v2381_v36  ;;  %v2371_v42 = vadd.f32 %v2370_v39, %v2365_v37  ;;  %v2627_v44 = vadd.f32 %v2314_v40, %v541_v14  ;;  %v2316_v45 = vpop.f32.mrb[3].mxu0  ;;  %v2412_v14 = vld [vmem:[%s3117_s2] sm:$0xff] }
 0x1b9   :  { %v2628_v46 = vadd.f32 %v2316_v45, %v543_v15 }
 0x1ba   :  { %v2387_v47 = vadd.f32 %v2386_v41, %v2382_v43  ;;  %v2366_v48 = vsel %vm2360_vm1, %v2627_v44, 0.0 }
 0x1bb   :  { %v2383_v49 = vmul.f32 %v2366_v48, %v2366_v48  ;;  %v2367_v50 = vsel %vm2361_vm2, %v2628_v46, 0.0  ;;  %v2372_v51 = vadd.f32 %v2371_v42, %v2366_v48 }
 0x1bc   :  { %v2384_v52 = vmul.f32 %v2367_v50, %v2367_v50 }
 0x1bd   :  { %v2373_v53 = vadd.f32 %v2372_v51, %v2367_v50  ;;  %v2388_v54 = vadd.f32 %v2387_v47, %v2383_v49 }
 0x1bf   :  { %2374 = vadd.xlane.f32.xlu0 %v2373_v53  ;;  %v2389_v55 = vadd.f32 %v2388_v54, %v2384_v52 }
 0x1c1   :  { %2390 = vadd.xlane.f32.xlu1 %v2389_v55 }
 0x24c   :  { %v2375_v57 = vpop.xlane.xlu0 %2374 }
 0x24d   :  { %v2376_v59 = vadd.f32 %v2375_v57, %v2368_v56 }
 0x24e   :  { %v2391_v2 = vpop.xlane.xlu1 %2390 }
 0x24f   :  { %2377 = vst.msk [vmem:[#allocation2] sm:$0xff] %vm24_vm0, %v2376_v59  ;;  %v2392_v61 = vadd.f32 %v2391_v2, %v2378_v58 }
 0x251   :  { %2393 = vst.msk [vmem:[#allocation3] sm:$0xff] %vm24_vm0, %v2392_v61  ;;  %vm2496_vm0 = vcmp.eq.s32.totalorder %v3012_v8, 1 }
 0x256   :  { %v2405_v62 = vld [vmem:[#allocation2] sm:$0xff] }
 0x257   :  { %v2406_v63 = vmul.f32 0.001953125, %v2405_v62 }
 0x258   :  { %v2407_v10 = vld [vmem:[#allocation3] sm:$0xff] }
 0x259   :  { %v2408_v11 = vmul.f32 0.001953125, %v2407_v10  ;;  %v2409_v3 = vmul.f32 %v2406_v63, %v2406_v63 }
 0x25b   :  { %v2410_v5 = vsub.f32 %v2408_v11, %v2409_v3 }
 0x25d   :  { %v2411_v12 = vmax.f32 %v2410_v5, 0.0 }
 0x25f   :  { %v2413_v13 = vadd.f32 1e-05, %v2411_v12 }
 0x261   :  { %2689 = vrsqrt.f32 %v2413_v13 }
 0x26b   :  { %v2690_v15 = vpop.eup %2689 }
 0x26c   :  { %v2415_v16 = vmul.f32 %v2690_v15, %v2412_v14 }
 0x26e   :  { %2430 = vperm.xlu0 %2683, %v2415_v16   ;;  %v2417_v18 = vmul.f32 %v2415_v16, %v2406_v63 }
 0x270   :  { %v2418_v19 = vsub.f32 %v2416_v17, %v2417_v18 }
 0x272   :  { %2443 = vperm.xlu1 %2684, %v2418_v19  }
 0x2ed   :  { %v2431_v27 = vpop.permute.xlu0 %2430 }
 0x2ee   :  { %v2433_v1 = vmul.f32 %v2431_v27, %v2419_v26  ;;  %v2434_v28 = vmul.f32 %v3036_v23, %v2431_v27  ;;  %v2435_v30 = vmul.f32 %v3038_v25, %v2431_v27  ;;  %v2436_v31 = vmul.f32 %v2431_v27, %v3042_v29 }
 0x2ef   :  { %v2437_v32 = vmul.f32 %v2431_v27, %v3045_v35  ;;  %v2438_v33 = vmul.f32 %v2627_v44, %v2431_v27  ;;  %v2439_v34 = vmul.f32 %v2628_v46, %v2431_v27  ;;  %v2440_v36 = vmul.f32 %v2431_v27, %v2426_v60 }
 0x2f1   :  { %v2444_v37 = vpop.permute.xlu1 %2443 }
 0x2f2   :  { %v2446_v38 = vadd.f32 %v2444_v37, %v2433_v1  ;;  %v2447_v39 = vadd.f32 %v2444_v37, %v2434_v28  ;;  %v2448_v40 = vadd.f32 %v2444_v37, %v2435_v30  ;;  %v2449_v41 = vadd.f32 %v2444_v37, %v2436_v31 }
 0x2f3   :  { %v2450_v42 = vadd.f32 %v2444_v37, %v2437_v32  ;;  %v2451_v43 = vadd.f32 %v2444_v37, %v2438_v33  ;;  %v2452_v45 = vadd.f32 %v2444_v37, %v2439_v34  ;;  %v2453_v47 = vadd.f32 %v2444_v37, %v2440_v36 }
 0x2f4   :  { %v2454_v48 = vmax.f32 %v2446_v38, 0.0  ;;  %v2455_v23 = vmax.f32 %v2447_v39, 0.0  ;;  %v2456_v49 = vmax.f32 %v2448_v40, 0.0  ;;  %v2457_v25 = vmax.f32 %v2449_v41, 0.0 }
 0x2f5   :  { %v2458_v50 = vmax.f32 %v2450_v42, 0.0  ;;  %v2459_v29 = vmax.f32 %v2451_v43, 0.0  ;;  %v2460_v51 = vmax.f32 %v2452_v45, 0.0  ;;  %v2461_v35 = vmax.f32 %v2453_v47, 0.0 }
 0x2f6   :  { %v2504_v44 = vsel %vm2496_vm0, %v2454_v48, 0.0  ;;  %v2505_v46 = vsel %vm2497_vm3, %v2455_v23, 0.0  ;;  %v2506_v52 = vsel %vm2498_vm4, %v2456_v49, 0.0  ;;  %v2507_v53 = vsel %vm2499_vm5, %v2457_v25, 0.0 }
 0x2f7   :  { %v2508_v54 = vsel %vm2500_vm6, %v2458_v50, 0.0  ;;  %v2509_v55 = vsel %vm2501_vm7, %v2459_v29, 0.0  ;;  %v2510_v56 = vsel %vm2502_vm8, %v2460_v51, 0.0  ;;  %v2511_v8 = vsel %vm2503_vm9, %v2461_v35, 0.0  ;;  %2512 = vst [vmem:[%s3119_s5] sm:$0xff] %v2504_v44  ;;  %2513 = vst [vmem:[%s3119_s5 + $0x8] sm:$0xff] %v2505_v46 }
 0x2f8   :  { %2514 = vst [vmem:[%s3119_s5 + $0x10] sm:$0xff] %v2506_v52  ;;  %2515 = vst [vmem:[%s3119_s5 + $0x18] sm:$0xff] %v2507_v53 }
 0x2f9   :  { %2516 = vst [vmem:[%s3119_s5 + $0x20] sm:$0xff] %v2508_v54  ;;  %2517 = vst [vmem:[%s3119_s5 + $0x28] sm:$0xff] %v2509_v55 }
 0x2fa   :  { %2518 = vst [vmem:[%s3119_s5 + $0x30] sm:$0xff] %v2510_v56  ;;  %2519 = vst [vmem:[%s3119_s5 + $0x38] sm:$0xff] %v2511_v8 }

</bundles_post_ra>
